<compile_context>
chip_gen: v7x
topology: tpu7x:2x2x1
jax: 0.10.0
libtpu: 0.0.40
codegen_flags: <defaults>
</compile_context>

<pallas_src>
import math

import jax
import jax.numpy as jnp
from jax.experimental import pallas as pl
from jax.experimental.pallas import tpu as pltpu

# ----------------------------------------------------------------------------
# Small synthetic sizes consistent with the module's forward pass
# ----------------------------------------------------------------------------
BATCH = 2
SEQ_LEN = 8            # padded length of the dynamic time series
DYN_IN = 5             # dynamic_input_size
STATIC_IN = 8          # static_input_size
HIDDEN = 32            # LSTM hidden_size
TEXT_DIM = 768         # BERT pooler_output dimension
NUM_NOTES = 4          # notes per patient (padded to a common count)
OUT_FEATURES = 1       # regression head
DECAY = 0.1
EPS = 1e-5

_LOG1MD = math.log(1.0 - DECAY)

SUBLANE = 8            # pad batch to a full sublane
LANE = 128             # lane-pad the head output to a full vreg lane group


def _layernorm(x, gamma, beta):
    mu = jnp.mean(x, axis=-1, keepdims=True)
    var = jnp.mean((x - mu) ** 2, axis=-1, keepdims=True)
    return (x - mu) * jax.lax.rsqrt(var + EPS) * gamma + beta


# ----------------------------------------------------------------------------
# Fused kernel: LSTM recurrence + LayerNorm(ht) + decay-weighted note sum
#               + fc1 (3x Linear/LN/ReLU, Dropout==identity) + fc2
# ----------------------------------------------------------------------------
def losnet_fused_kernel(
        x_ref, len_ref,                                   # (T,B,D), (B,1)
        wih_ref, whh_ref, b_ref, gln_ref, bln_ref,        # LSTM + ht LayerNorm
        iv_ref, emb_ref, st_ref,                          # (B,N), (N,B,768), (B,S)
        w1h_ref, w1z_ref, w1s_ref, b1_ref, g1_ref, be1_ref,
        w2_ref, b2_ref, g2_ref, be2_ref,
        w3_ref, b3_ref, g3_ref, be3_ref,
        w4_ref, b4_ref,                                   # lane-padded head
        out_ref):
    T = x_ref.shape[0]
    B = x_ref.shape[1]
    H = whh_ref.shape[0]
    N = iv_ref.shape[1]

    # --- LSTM recurrence (weights / bias / lengths held in vregs) -----------
    w_ih = wih_ref[...]
    w_hh = whh_ref[...]
    bias = b_ref[...]
    lengths = len_ref[...]                                # (B, 1) int32

    # lanes [2H, 3H) hold the cell-candidate gate -> tanh; everything else sigmoid
    lane = jax.lax.broadcasted_iota(jnp.int32, (B, 4 * H), 1)
    is_g_lane = (lane >= 2 * H) & (lane < 3 * H)

    def step(t, carry):
        h, c = carry
        x_t = x_ref[t]                                    # (B, DYN_IN)
        gates = (jnp.dot(x_t, w_ih, preferred_element_type=jnp.float32)
                 + jnp.dot(h, w_hh, preferred_element_type=jnp.float32)
                 + bias)                                  # (B, 4H), order i,f,g,o
        # two full-vreg EUP passes + one VPU select (instead of 4 sliced calls)
        act = jnp.where(is_g_lane, jnp.tanh(gates), jax.nn.sigmoid(gates))
        i_g = act[:, 0 * H:1 * H]
        f_g = act[:, 1 * H:2 * H]
        g_g = act[:, 2 * H:3 * H]
        o_g = act[:, 3 * H:4 * H]
        c_new = f_g * c + i_g * g_g
        h_new = o_g * jnp.tanh(c_new)
        # packed-sequence semantics: freeze state once t >= length[b]
        valid = t < lengths                               # (B, 1) bool
        return (jnp.where(valid, h_new, h), jnp.where(valid, c_new, c))

    h0 = jnp.zeros((B, H), jnp.float32)
    c0 = jnp.zeros((B, H), jnp.float32)
    hT, _ = jax.lax.fori_loop(0, T, step, (h0, c0), unroll=True)

    ht = _layernorm(hT, gln_ref[...], bln_ref[...])       # (B, H)

    # --- decay-weighted sum of note embeddings ------------------------------
    # zt[b] = sum_n (1-decay)^interval[b,n] * emb[b,n,:]
    # embeddings are note-major (N, B, 768): each emb_ref[n] is a natural
    # (B-sublane, 768-lane) tile; short unrolled FMA over N, no temporaries.
    w = jnp.exp(iv_ref[...] * _LOG1MD)                    # (B, N)
    zt = w[:, 0:1] * emb_ref[0]
    for n in range(1, N):
        zt = zt + w[:, n:n + 1] * emb_ref[n]              # (B, 768)

    st = st_ref[...]                                      # (B, S)

    # --- fc1: first Linear split over the concat [ht | zt | st] boundary ----
    h1 = (jnp.dot(ht, w1h_ref[...], preferred_element_type=jnp.float32)
          + jnp.dot(zt, w1z_ref[...], preferred_element_type=jnp.float32)
          + jnp.dot(st, w1s_ref[...], preferred_element_type=jnp.float32)
          + b1_ref[...])
    h1 = jnp.maximum(_layernorm(h1, g1_ref[...], be1_ref[...]), 0.0)

    h2 = jnp.dot(h1, w2_ref[...], preferred_element_type=jnp.float32) + b2_ref[...]
    h2 = jnp.maximum(_layernorm(h2, g2_ref[...], be2_ref[...]), 0.0)
    # nn.Dropout(0.2) is identity at inference time (no-op here).

    h3 = jnp.dot(h2, w3_ref[...], preferred_element_type=jnp.float32) + b3_ref[...]
    h3 = jnp.maximum(_layernorm(h3, g3_ref[...], be3_ref[...]), 0.0)

    # --- fc2 (head weights lane-padded to 128 -> unmasked full-width store) --
    out_ref[...] = (jnp.dot(h3, w4_ref[...], preferred_element_type=jnp.float32)
                    + b4_ref[...])


# ----------------------------------------------------------------------------
# Host wrapper: sublane-pad the batch, lane-pad the head, one pallas_call
# ----------------------------------------------------------------------------
def losnet_forward(params, dynamic_x_tbd, lengths, note_embeddings,
                   note_intervals, static_batch):
    T, B, _ = dynamic_x_tbd.shape
    Bp = max(SUBLANE, ((B + SUBLANE - 1) // SUBLANE) * SUBLANE)
    pb = Bp - B

    x_p = jnp.pad(dynamic_x_tbd, ((0, 0), (0, pb), (0, 0)))
    len_p = jnp.pad(lengths, ((0, pb), (0, 0)))           # padded rows: length 0
    iv_p = jnp.pad(note_intervals, ((0, pb), (0, 0)))
    emb_p = jnp.pad(note_embeddings, ((0, pb), (0, 0), (0, 0)))
    emb_nbd = jnp.transpose(emb_p, (1, 0, 2))             # note-major (N, Bp, 768)
    st_p = jnp.pad(static_batch, ((0, pb), (0, 0)))

    # lane-pad the regression head so the kernel writes a full 128-lane slab
    w4 = params['mlp'][14]
    b4 = params['mlp'][15]
    w4_p = jnp.pad(w4, ((0, 0), (0, LANE - w4.shape[1])))
    b4_p = jnp.pad(b4, ((0, 0), (0, LANE - b4.shape[1])))
    mlp = params['mlp'][:14] + (w4_p, b4_p)

    vmem = pl.BlockSpec(memory_space=pltpu.MemorySpace.VMEM)
    n_in = 10 + len(mlp)

    out_padded = pl.pallas_call(
        losnet_fused_kernel,
        out_shape=jax.ShapeDtypeStruct((Bp, LANE), jnp.float32),
        in_specs=[vmem] * n_in,
        out_specs=vmem,
    )(x_p, len_p,
      params['w_ih'], params['w_hh'], params['lstm_b'],
      params['ln_ht_g'], params['ln_ht_b'],
      iv_p, emb_nbd, st_p,
      *mlp)

    # task == 'reg' -> y_pred = logits
    return out_padded[:B, :OUT_FEATURES]


# ----------------------------------------------------------------------------
# Deterministic synthetic parameters & inputs
# ----------------------------------------------------------------------------
def make_params(key):
    ks = iter(jax.random.split(key, 32))

    def rnd(shape, scale=0.05):
        return jax.random.normal(next(ks), shape, jnp.float32) * scale

    params = {
        'w_ih': rnd((DYN_IN, 4 * HIDDEN)),
        'w_hh': rnd((HIDDEN, 4 * HIDDEN)),
        'lstm_b': rnd((1, 4 * HIDDEN)),          # b_ih + b_hh combined
        'ln_ht_g': jnp.ones((1, HIDDEN), jnp.float32),
        'ln_ht_b': jnp.zeros((1, HIDDEN), jnp.float32),
        # fc1 first Linear stored pre-split over the [ht | zt | st] concat boundary
        'mlp': (
            rnd((HIDDEN, 256)), rnd((TEXT_DIM, 256)), rnd((STATIC_IN, 256)),
            rnd((1, 256)),
            jnp.ones((1, 256), jnp.float32), jnp.zeros((1, 256), jnp.float32),
            rnd((256, 128)), rnd((1, 128)),
            jnp.ones((1, 128), jnp.float32), jnp.zeros((1, 128), jnp.float32),
            rnd((128, 64)), rnd((1, 64)),
            jnp.ones((1, 64), jnp.float32), jnp.zeros((1, 64), jnp.float32),
            rnd((64, OUT_FEATURES)), rnd((1, OUT_FEATURES)),
        ),
    }
    return params


if __name__ == "__main__":
    key = jax.random.PRNGKey(0)
    kp, k1, k2, k3, k4 = jax.random.split(key, 5)

    params = make_params(kp)

    # dynamic time-series, time-major (T, B, DYN_IN); per-patient valid lengths
    dynamic_x = jax.random.normal(k1, (SEQ_LEN, BATCH, DYN_IN), jnp.float32)
    lengths = jnp.array([[SEQ_LEN], [SEQ_LEN - 3]], jnp.int32)

    # TODO(synk): Bio_ClinicalBERT text_model has no clean Pallas equivalent here;
    # its per-note pooler_output is taken as a precomputed input tensor.
    note_embeddings = jax.random.normal(k2, (BATCH, NUM_NOTES, TEXT_DIM), jnp.float32)
    note_intervals = jax.random.uniform(k3, (BATCH, NUM_NOTES), jnp.float32,
                                        minval=0.0, maxval=10.0)

    static_batch = jax.random.normal(k4, (BATCH, STATIC_IN), jnp.float32)

    fwd = jax.jit(losnet_forward)
    y_pred = fwd(params, dynamic_x, lengths, note_embeddings,
                 note_intervals, static_batch)
    y_pred = jax.block_until_ready(y_pred)
    assert y_pred.shape == (BATCH, OUT_FEATURES)
    assert bool(jnp.all(jnp.isfinite(y_pred)))
    print("KERNEL_OK")
</pallas_src>

<mosaic_0001>
module attributes {stable_mosaic.version = 11 : i64} {
  func.func @losnet_fused_kernel(%arg0: memref<8x8x5xf32, #tpu.memory_space<vmem>>, %arg1: memref<8x1xi32, #tpu.memory_space<vmem>>, %arg2: memref<5x128xf32, #tpu.memory_space<vmem>>, %arg3: memref<32x128xf32, #tpu.memory_space<vmem>>, %arg4: memref<1x128xf32, #tpu.memory_space<vmem>>, %arg5: memref<1x32xf32, #tpu.memory_space<vmem>>, %arg6: memref<1x32xf32, #tpu.memory_space<vmem>>, %arg7: memref<8x4xf32, #tpu.memory_space<vmem>>, %arg8: memref<4x8x768xf32, #tpu.memory_space<vmem>>, %arg9: memref<8x8xf32, #tpu.memory_space<vmem>>, %arg10: memref<32x256xf32, #tpu.memory_space<vmem>>, %arg11: memref<768x256xf32, #tpu.memory_space<vmem>>, %arg12: memref<8x256xf32, #tpu.memory_space<vmem>>, %arg13: memref<1x256xf32, #tpu.memory_space<vmem>>, %arg14: memref<1x256xf32, #tpu.memory_space<vmem>>, %arg15: memref<1x256xf32, #tpu.memory_space<vmem>>, %arg16: memref<256x128xf32, #tpu.memory_space<vmem>>, %arg17: memref<1x128xf32, #tpu.memory_space<vmem>>, %arg18: memref<1x128xf32, #tpu.memory_space<vmem>>, %arg19: memref<1x128xf32, #tpu.memory_space<vmem>>, %arg20: memref<128x64xf32, #tpu.memory_space<vmem>>, %arg21: memref<1x64xf32, #tpu.memory_space<vmem>>, %arg22: memref<1x64xf32, #tpu.memory_space<vmem>>, %arg23: memref<1x64xf32, #tpu.memory_space<vmem>>, %arg24: memref<64x128xf32, #tpu.memory_space<vmem>>, %arg25: memref<1x128xf32, #tpu.memory_space<vmem>>, %arg26: memref<8x128xf32, #tpu.memory_space<vmem>>) attributes {dimension_semantics = [], scalar_prefetch = 0 : i64, scratch_operands = 0 : i64, tpu.core_type = #tpu.core_type<tc>} {
    %c0 = arith.constant 0 : index
    %c0_0 = arith.constant 0 : index
    %0 = vector.load %arg2[%c0, %c0_0] : memref<5x128xf32, #tpu.memory_space<vmem>>, vector<5x128xf32>
    %c0_1 = arith.constant 0 : index
    %c0_2 = arith.constant 0 : index
    %1 = vector.load %arg3[%c0_1, %c0_2] : memref<32x128xf32, #tpu.memory_space<vmem>>, vector<32x128xf32>
    %c0_3 = arith.constant 0 : index
    %c0_4 = arith.constant 0 : index
    %2 = vector.load %arg4[%c0_3, %c0_4] : memref<1x128xf32, #tpu.memory_space<vmem>>, vector<1x128xf32>
    %c0_5 = arith.constant 0 : index
    %c0_6 = arith.constant 0 : index
    %3 = vector.load %arg1[%c0_5, %c0_6] : memref<8x1xi32, #tpu.memory_space<vmem>>, vector<8x1xi32>
    %4 = tpu.iota {dimensions = array<i32: 1>} : vector<8x128xi32>
    %c64_i32 = arith.constant 64 : i32
    %5 = vector.broadcast %c64_i32 : i32 to vector<8x128xi32>
    %6 = arith.cmpi sge, %4, %5 : vector<8x128xi32>
    %c96_i32 = arith.constant 96 : i32
    %7 = vector.broadcast %c96_i32 : i32 to vector<8x128xi32>
    %8 = arith.cmpi slt, %4, %7 : vector<8x128xi32>
    %9 = arith.andi %6, %8 : vector<8x128xi1>
    %cst = arith.constant 0.000000e+00 : f32
    %10 = vector.broadcast %cst : f32 to vector<8x32xf32>
    %cst_7 = arith.constant 0.000000e+00 : f32
    %11 = vector.broadcast %cst_7 : f32 to vector<8x32xf32>
    %c0_i32 = arith.constant 0 : i32
    %12 = arith.index_cast %c0_i32 : i32 to index
    %c0_8 = arith.constant 0 : index
    %c0_9 = arith.constant 0 : index
    %13 = vector.load %arg0[%12, %c0_8, %c0_9] : memref<8x8x5xf32, #tpu.memory_space<vmem>>, vector<1x8x5xf32>
    %14 = vector.shape_cast %13 : vector<1x8x5xf32> to vector<8x5xf32>
    %cst_10 = arith.constant dense<0.000000e+00> : vector<8x128xf32>
    %15 = tpu.matmul %14, %0, %cst_10 {dimension_numbers = #tpu.dot_dimension_numbers<[1], [0], [0], [1], [0, 0, 1, 1], [], []>} : vector<8x5xf32>, vector<5x128xf32>, vector<8x128xf32> -> vector<8x128xf32>
    %cst_11 = arith.constant dense<0.000000e+00> : vector<8x128xf32>
    %16 = tpu.matmul %10, %1, %cst_11 {dimension_numbers = #tpu.dot_dimension_numbers<[1], [0], [0], [1], [0, 0, 1, 1], [], []>} : vector<8x32xf32>, vector<32x128xf32>, vector<8x128xf32> -> vector<8x128xf32>
    %17 = arith.addf %15, %16 : vector<8x128xf32>
    %18 = vector.broadcast %2 : vector<1x128xf32> to vector<8x128xf32>
    %19 = arith.addf %17, %18 : vector<8x128xf32>
    %20 = math.tanh %19 : vector<8x128xf32>
    %21 = arith.negf %19 : vector<8x128xf32>
    %22 = math.exp %21 : vector<8x128xf32>
    %cst_12 = arith.constant 1.000000e+00 : f32
    %23 = vector.broadcast %cst_12 : f32 to vector<8x128xf32>
    %24 = arith.addf %23, %22 : vector<8x128xf32>
    %25 = arith.divf %23, %24 : vector<8x128xf32>
    %26 = arith.select %9, %20, %25 : vector<8x128xi1>, vector<8x128xf32>
    %27 = vector.extract_strided_slice %26 {offsets = [0, 0], sizes = [8, 32], strides = [1, 1]} : vector<8x128xf32> to vector<8x32xf32>
    %28 = vector.extract_strided_slice %26 {offsets = [0, 32], sizes = [8, 32], strides = [1, 1]} : vector<8x128xf32> to vector<8x32xf32>
    %29 = vector.extract_strided_slice %26 {offsets = [0, 64], sizes = [8, 32], strides = [1, 1]} : vector<8x128xf32> to vector<8x32xf32>
    %30 = vector.extract_strided_slice %26 {offsets = [0, 96], sizes = [8, 32], strides = [1, 1]} : vector<8x128xf32> to vector<8x32xf32>
    %31 = arith.mulf %28, %11 : vector<8x32xf32>
    %32 = arith.mulf %27, %29 : vector<8x32xf32>
    %33 = arith.addf %31, %32 : vector<8x32xf32>
    %34 = math.tanh %33 : vector<8x32xf32>
    %35 = arith.mulf %30, %34 : vector<8x32xf32>
    %36 = vector.broadcast %c0_i32 : i32 to vector<8x1xi32>
    %37 = arith.cmpi slt, %36, %3 : vector<8x1xi32>
    %38 = vector.shape_cast %37 : vector<8x1xi1> to vector<8x1xi1>
    %39 = vector.broadcast %38 : vector<8x1xi1> to vector<8x32xi1>
    %40 = arith.select %39, %35, %10 : vector<8x32xi1>, vector<8x32xf32>
    %41 = vector.shape_cast %37 : vector<8x1xi1> to vector<8x1xi1>
    %42 = vector.broadcast %41 : vector<8x1xi1> to vector<8x32xi1>
    %43 = arith.select %42, %33, %11 : vector<8x32xi1>, vector<8x32xf32>
    %c1_i32 = arith.constant 1 : i32
    %44 = arith.index_cast %c1_i32 : i32 to index
    %c0_13 = arith.constant 0 : index
    %c0_14 = arith.constant 0 : index
    %45 = vector.load %arg0[%44, %c0_13, %c0_14] : memref<8x8x5xf32, #tpu.memory_space<vmem>>, vector<1x8x5xf32>
    %46 = vector.shape_cast %45 : vector<1x8x5xf32> to vector<8x5xf32>
    %cst_15 = arith.constant dense<0.000000e+00> : vector<8x128xf32>
    %47 = tpu.matmul %46, %0, %cst_15 {dimension_numbers = #tpu.dot_dimension_numbers<[1], [0], [0], [1], [0, 0, 1, 1], [], []>} : vector<8x5xf32>, vector<5x128xf32>, vector<8x128xf32> -> vector<8x128xf32>
    %cst_16 = arith.constant dense<0.000000e+00> : vector<8x128xf32>
    %48 = tpu.matmul %40, %1, %cst_16 {dimension_numbers = #tpu.dot_dimension_numbers<[1], [0], [0], [1], [0, 0, 1, 1], [], []>} : vector<8x32xf32>, vector<32x128xf32>, vector<8x128xf32> -> vector<8x128xf32>
    %49 = arith.addf %47, %48 : vector<8x128xf32>
    %50 = vector.broadcast %2 : vector<1x128xf32> to vector<8x128xf32>
    %51 = arith.addf %49, %50 : vector<8x128xf32>
    %52 = math.tanh %51 : vector<8x128xf32>
    %53 = arith.negf %51 : vector<8x128xf32>
    %54 = math.exp %53 : vector<8x128xf32>
    %cst_17 = arith.constant 1.000000e+00 : f32
    %55 = vector.broadcast %cst_17 : f32 to vector<8x128xf32>
    %56 = arith.addf %55, %54 : vector<8x128xf32>
    %57 = arith.divf %55, %56 : vector<8x128xf32>
    %58 = arith.select %9, %52, %57 : vector<8x128xi1>, vector<8x128xf32>
    %59 = vector.extract_strided_slice %58 {offsets = [0, 0], sizes = [8, 32], strides = [1, 1]} : vector<8x128xf32> to vector<8x32xf32>
    %60 = vector.extract_strided_slice %58 {offsets = [0, 32], sizes = [8, 32], strides = [1, 1]} : vector<8x128xf32> to vector<8x32xf32>
    %61 = vector.extract_strided_slice %58 {offsets = [0, 64], sizes = [8, 32], strides = [1, 1]} : vector<8x128xf32> to vector<8x32xf32>
    %62 = vector.extract_strided_slice %58 {offsets = [0, 96], sizes = [8, 32], strides = [1, 1]} : vector<8x128xf32> to vector<8x32xf32>
    %63 = arith.mulf %60, %43 : vector<8x32xf32>
    %64 = arith.mulf %59, %61 : vector<8x32xf32>
    %65 = arith.addf %63, %64 : vector<8x32xf32>
    %66 = math.tanh %65 : vector<8x32xf32>
    %67 = arith.mulf %62, %66 : vector<8x32xf32>
    %68 = vector.broadcast %c1_i32 : i32 to vector<8x1xi32>
    %69 = arith.cmpi slt, %68, %3 : vector<8x1xi32>
    %70 = vector.shape_cast %69 : vector<8x1xi1> to vector<8x1xi1>
    %71 = vector.broadcast %70 : vector<8x1xi1> to vector<8x32xi1>
    %72 = arith.select %71, %67, %40 : vector<8x32xi1>, vector<8x32xf32>
    %73 = vector.shape_cast %69 : vector<8x1xi1> to vector<8x1xi1>
    %74 = vector.broadcast %73 : vector<8x1xi1> to vector<8x32xi1>
    %75 = arith.select %74, %65, %43 : vector<8x32xi1>, vector<8x32xf32>
    %c2_i32 = arith.constant 2 : i32
    %76 = arith.index_cast %c2_i32 : i32 to index
    %c0_18 = arith.constant 0 : index
    %c0_19 = arith.constant 0 : index
    %77 = vector.load %arg0[%76, %c0_18, %c0_19] : memref<8x8x5xf32, #tpu.memory_space<vmem>>, vector<1x8x5xf32>
    %78 = vector.shape_cast %77 : vector<1x8x5xf32> to vector<8x5xf32>
    %cst_20 = arith.constant dense<0.000000e+00> : vector<8x128xf32>
    %79 = tpu.matmul %78, %0, %cst_20 {dimension_numbers = #tpu.dot_dimension_numbers<[1], [0], [0], [1], [0, 0, 1, 1], [], []>} : vector<8x5xf32>, vector<5x128xf32>, vector<8x128xf32> -> vector<8x128xf32>
    %cst_21 = arith.constant dense<0.000000e+00> : vector<8x128xf32>
    %80 = tpu.matmul %72, %1, %cst_21 {dimension_numbers = #tpu.dot_dimension_numbers<[1], [0], [0], [1], [0, 0, 1, 1], [], []>} : vector<8x32xf32>, vector<32x128xf32>, vector<8x128xf32> -> vector<8x128xf32>
    %81 = arith.addf %79, %80 : vector<8x128xf32>
    %82 = vector.broadcast %2 : vector<1x128xf32> to vector<8x128xf32>
    %83 = arith.addf %81, %82 : vector<8x128xf32>
    %84 = math.tanh %83 : vector<8x128xf32>
    %85 = arith.negf %83 : vector<8x128xf32>
    %86 = math.exp %85 : vector<8x128xf32>
    %cst_22 = arith.constant 1.000000e+00 : f32
    %87 = vector.broadcast %cst_22 : f32 to vector<8x128xf32>
    %88 = arith.addf %87, %86 : vector<8x128xf32>
    %89 = arith.divf %87, %88 : vector<8x128xf32>
    %90 = arith.select %9, %84, %89 : vector<8x128xi1>, vector<8x128xf32>
    %91 = vector.extract_strided_slice %90 {offsets = [0, 0], sizes = [8, 32], strides = [1, 1]} : vector<8x128xf32> to vector<8x32xf32>
    %92 = vector.extract_strided_slice %90 {offsets = [0, 32], sizes = [8, 32], strides = [1, 1]} : vector<8x128xf32> to vector<8x32xf32>
    %93 = vector.extract_strided_slice %90 {offsets = [0, 64], sizes = [8, 32], strides = [1, 1]} : vector<8x128xf32> to vector<8x32xf32>
    %94 = vector.extract_strided_slice %90 {offsets = [0, 96], sizes = [8, 32], strides = [1, 1]} : vector<8x128xf32> to vector<8x32xf32>
    %95 = arith.mulf %92, %75 : vector<8x32xf32>
    %96 = arith.mulf %91, %93 : vector<8x32xf32>
    %97 = arith.addf %95, %96 : vector<8x32xf32>
    %98 = math.tanh %97 : vector<8x32xf32>
    %99 = arith.mulf %94, %98 : vector<8x32xf32>
    %100 = vector.broadcast %c2_i32 : i32 to vector<8x1xi32>
    %101 = arith.cmpi slt, %100, %3 : vector<8x1xi32>
    %102 = vector.shape_cast %101 : vector<8x1xi1> to vector<8x1xi1>
    %103 = vector.broadcast %102 : vector<8x1xi1> to vector<8x32xi1>
    %104 = arith.select %103, %99, %72 : vector<8x32xi1>, vector<8x32xf32>
    %105 = vector.shape_cast %101 : vector<8x1xi1> to vector<8x1xi1>
    %106 = vector.broadcast %105 : vector<8x1xi1> to vector<8x32xi1>
    %107 = arith.select %106, %97, %75 : vector<8x32xi1>, vector<8x32xf32>
    %c3_i32 = arith.constant 3 : i32
    %108 = arith.index_cast %c3_i32 : i32 to index
    %c0_23 = arith.constant 0 : index
    %c0_24 = arith.constant 0 : index
    %109 = vector.load %arg0[%108, %c0_23, %c0_24] : memref<8x8x5xf32, #tpu.memory_space<vmem>>, vector<1x8x5xf32>
    %110 = vector.shape_cast %109 : vector<1x8x5xf32> to vector<8x5xf32>
    %cst_25 = arith.constant dense<0.000000e+00> : vector<8x128xf32>
    %111 = tpu.matmul %110, %0, %cst_25 {dimension_numbers = #tpu.dot_dimension_numbers<[1], [0], [0], [1], [0, 0, 1, 1], [], []>} : vector<8x5xf32>, vector<5x128xf32>, vector<8x128xf32> -> vector<8x128xf32>
    %cst_26 = arith.constant dense<0.000000e+00> : vector<8x128xf32>
    %112 = tpu.matmul %104, %1, %cst_26 {dimension_numbers = #tpu.dot_dimension_numbers<[1], [0], [0], [1], [0, 0, 1, 1], [], []>} : vector<8x32xf32>, vector<32x128xf32>, vector<8x128xf32> -> vector<8x128xf32>
    %113 = arith.addf %111, %112 : vector<8x128xf32>
    %114 = vector.broadcast %2 : vector<1x128xf32> to vector<8x128xf32>
    %115 = arith.addf %113, %114 : vector<8x128xf32>
    %116 = math.tanh %115 : vector<8x128xf32>
    %117 = arith.negf %115 : vector<8x128xf32>
    %118 = math.exp %117 : vector<8x128xf32>
    %cst_27 = arith.constant 1.000000e+00 : f32
    %119 = vector.broadcast %cst_27 : f32 to vector<8x128xf32>
    %120 = arith.addf %119, %118 : vector<8x128xf32>
    %121 = arith.divf %119, %120 : vector<8x128xf32>
    %122 = arith.select %9, %116, %121 : vector<8x128xi1>, vector<8x128xf32>
    %123 = vector.extract_strided_slice %122 {offsets = [0, 0], sizes = [8, 32], strides = [1, 1]} : vector<8x128xf32> to vector<8x32xf32>
    %124 = vector.extract_strided_slice %122 {offsets = [0, 32], sizes = [8, 32], strides = [1, 1]} : vector<8x128xf32> to vector<8x32xf32>
    %125 = vector.extract_strided_slice %122 {offsets = [0, 64], sizes = [8, 32], strides = [1, 1]} : vector<8x128xf32> to vector<8x32xf32>
    %126 = vector.extract_strided_slice %122 {offsets = [0, 96], sizes = [8, 32], strides = [1, 1]} : vector<8x128xf32> to vector<8x32xf32>
    %127 = arith.mulf %124, %107 : vector<8x32xf32>
    %128 = arith.mulf %123, %125 : vector<8x32xf32>
    %129 = arith.addf %127, %128 : vector<8x32xf32>
    %130 = math.tanh %129 : vector<8x32xf32>
    %131 = arith.mulf %126, %130 : vector<8x32xf32>
    %132 = vector.broadcast %c3_i32 : i32 to vector<8x1xi32>
    %133 = arith.cmpi slt, %132, %3 : vector<8x1xi32>
    %134 = vector.shape_cast %133 : vector<8x1xi1> to vector<8x1xi1>
    %135 = vector.broadcast %134 : vector<8x1xi1> to vector<8x32xi1>
    %136 = arith.select %135, %131, %104 : vector<8x32xi1>, vector<8x32xf32>
    %137 = vector.shape_cast %133 : vector<8x1xi1> to vector<8x1xi1>
    %138 = vector.broadcast %137 : vector<8x1xi1> to vector<8x32xi1>
    %139 = arith.select %138, %129, %107 : vector<8x32xi1>, vector<8x32xf32>
    %c4_i32 = arith.constant 4 : i32
    %140 = arith.index_cast %c4_i32 : i32 to index
    %c0_28 = arith.constant 0 : index
    %c0_29 = arith.constant 0 : index
    %141 = vector.load %arg0[%140, %c0_28, %c0_29] : memref<8x8x5xf32, #tpu.memory_space<vmem>>, vector<1x8x5xf32>
    %142 = vector.shape_cast %141 : vector<1x8x5xf32> to vector<8x5xf32>
    %cst_30 = arith.constant dense<0.000000e+00> : vector<8x128xf32>
    %143 = tpu.matmul %142, %0, %cst_30 {dimension_numbers = #tpu.dot_dimension_numbers<[1], [0], [0], [1], [0, 0, 1, 1], [], []>} : vector<8x5xf32>, vector<5x128xf32>, vector<8x128xf32> -> vector<8x128xf32>
    %cst_31 = arith.constant dense<0.000000e+00> : vector<8x128xf32>
    %144 = tpu.matmul %136, %1, %cst_31 {dimension_numbers = #tpu.dot_dimension_numbers<[1], [0], [0], [1], [0, 0, 1, 1], [], []>} : vector<8x32xf32>, vector<32x128xf32>, vector<8x128xf32> -> vector<8x128xf32>
    %145 = arith.addf %143, %144 : vector<8x128xf32>
    %146 = vector.broadcast %2 : vector<1x128xf32> to vector<8x128xf32>
    %147 = arith.addf %145, %146 : vector<8x128xf32>
    %148 = math.tanh %147 : vector<8x128xf32>
    %149 = arith.negf %147 : vector<8x128xf32>
    %150 = math.exp %149 : vector<8x128xf32>
    %cst_32 = arith.constant 1.000000e+00 : f32
    %151 = vector.broadcast %cst_32 : f32 to vector<8x128xf32>
    %152 = arith.addf %151, %150 : vector<8x128xf32>
    %153 = arith.divf %151, %152 : vector<8x128xf32>
    %154 = arith.select %9, %148, %153 : vector<8x128xi1>, vector<8x128xf32>
    %155 = vector.extract_strided_slice %154 {offsets = [0, 0], sizes = [8, 32], strides = [1, 1]} : vector<8x128xf32> to vector<8x32xf32>
    %156 = vector.extract_strided_slice %154 {offsets = [0, 32], sizes = [8, 32], strides = [1, 1]} : vector<8x128xf32> to vector<8x32xf32>
    %157 = vector.extract_strided_slice %154 {offsets = [0, 64], sizes = [8, 32], strides = [1, 1]} : vector<8x128xf32> to vector<8x32xf32>
    %158 = vector.extract_strided_slice %154 {offsets = [0, 96], sizes = [8, 32], strides = [1, 1]} : vector<8x128xf32> to vector<8x32xf32>
    %159 = arith.mulf %156, %139 : vector<8x32xf32>
    %160 = arith.mulf %155, %157 : vector<8x32xf32>
    %161 = arith.addf %159, %160 : vector<8x32xf32>
    %162 = math.tanh %161 : vector<8x32xf32>
    %163 = arith.mulf %158, %162 : vector<8x32xf32>
    %164 = vector.broadcast %c4_i32 : i32 to vector<8x1xi32>
    %165 = arith.cmpi slt, %164, %3 : vector<8x1xi32>
    %166 = vector.shape_cast %165 : vector<8x1xi1> to vector<8x1xi1>
    %167 = vector.broadcast %166 : vector<8x1xi1> to vector<8x32xi1>
    %168 = arith.select %167, %163, %136 : vector<8x32xi1>, vector<8x32xf32>
    %169 = vector.shape_cast %165 : vector<8x1xi1> to vector<8x1xi1>
    %170 = vector.broadcast %169 : vector<8x1xi1> to vector<8x32xi1>
    %171 = arith.select %170, %161, %139 : vector<8x32xi1>, vector<8x32xf32>
    %c5_i32 = arith.constant 5 : i32
    %172 = arith.index_cast %c5_i32 : i32 to index
    %c0_33 = arith.constant 0 : index
    %c0_34 = arith.constant 0 : index
    %173 = vector.load %arg0[%172, %c0_33, %c0_34] : memref<8x8x5xf32, #tpu.memory_space<vmem>>, vector<1x8x5xf32>
    %174 = vector.shape_cast %173 : vector<1x8x5xf32> to vector<8x5xf32>
    %cst_35 = arith.constant dense<0.000000e+00> : vector<8x128xf32>
    %175 = tpu.matmul %174, %0, %cst_35 {dimension_numbers = #tpu.dot_dimension_numbers<[1], [0], [0], [1], [0, 0, 1, 1], [], []>} : vector<8x5xf32>, vector<5x128xf32>, vector<8x128xf32> -> vector<8x128xf32>
    %cst_36 = arith.constant dense<0.000000e+00> : vector<8x128xf32>
    %176 = tpu.matmul %168, %1, %cst_36 {dimension_numbers = #tpu.dot_dimension_numbers<[1], [0], [0], [1], [0, 0, 1, 1], [], []>} : vector<8x32xf32>, vector<32x128xf32>, vector<8x128xf32> -> vector<8x128xf32>
    %177 = arith.addf %175, %176 : vector<8x128xf32>
    %178 = vector.broadcast %2 : vector<1x128xf32> to vector<8x128xf32>
    %179 = arith.addf %177, %178 : vector<8x128xf32>
    %180 = math.tanh %179 : vector<8x128xf32>
    %181 = arith.negf %179 : vector<8x128xf32>
    %182 = math.exp %181 : vector<8x128xf32>
    %cst_37 = arith.constant 1.000000e+00 : f32
    %183 = vector.broadcast %cst_37 : f32 to vector<8x128xf32>
    %184 = arith.addf %183, %182 : vector<8x128xf32>
    %185 = arith.divf %183, %184 : vector<8x128xf32>
    %186 = arith.select %9, %180, %185 : vector<8x128xi1>, vector<8x128xf32>
    %187 = vector.extract_strided_slice %186 {offsets = [0, 0], sizes = [8, 32], strides = [1, 1]} : vector<8x128xf32> to vector<8x32xf32>
    %188 = vector.extract_strided_slice %186 {offsets = [0, 32], sizes = [8, 32], strides = [1, 1]} : vector<8x128xf32> to vector<8x32xf32>
    %189 = vector.extract_strided_slice %186 {offsets = [0, 64], sizes = [8, 32], strides = [1, 1]} : vector<8x128xf32> to vector<8x32xf32>
    %190 = vector.extract_strided_slice %186 {offsets = [0, 96], sizes = [8, 32], strides = [1, 1]} : vector<8x128xf32> to vector<8x32xf32>
    %191 = arith.mulf %188, %171 : vector<8x32xf32>
    %192 = arith.mulf %187, %189 : vector<8x32xf32>
    %193 = arith.addf %191, %192 : vector<8x32xf32>
    %194 = math.tanh %193 : vector<8x32xf32>
    %195 = arith.mulf %190, %194 : vector<8x32xf32>
    %196 = vector.broadcast %c5_i32 : i32 to vector<8x1xi32>
    %197 = arith.cmpi slt, %196, %3 : vector<8x1xi32>
    %198 = vector.shape_cast %197 : vector<8x1xi1> to vector<8x1xi1>
    %199 = vector.broadcast %198 : vector<8x1xi1> to vector<8x32xi1>
    %200 = arith.select %199, %195, %168 : vector<8x32xi1>, vector<8x32xf32>
    %201 = vector.shape_cast %197 : vector<8x1xi1> to vector<8x1xi1>
    %202 = vector.broadcast %201 : vector<8x1xi1> to vector<8x32xi1>
    %203 = arith.select %202, %193, %171 : vector<8x32xi1>, vector<8x32xf32>
    %c6_i32 = arith.constant 6 : i32
    %204 = arith.index_cast %c6_i32 : i32 to index
    %c0_38 = arith.constant 0 : index
    %c0_39 = arith.constant 0 : index
    %205 = vector.load %arg0[%204, %c0_38, %c0_39] : memref<8x8x5xf32, #tpu.memory_space<vmem>>, vector<1x8x5xf32>
    %206 = vector.shape_cast %205 : vector<1x8x5xf32> to vector<8x5xf32>
    %cst_40 = arith.constant dense<0.000000e+00> : vector<8x128xf32>
    %207 = tpu.matmul %206, %0, %cst_40 {dimension_numbers = #tpu.dot_dimension_numbers<[1], [0], [0], [1], [0, 0, 1, 1], [], []>} : vector<8x5xf32>, vector<5x128xf32>, vector<8x128xf32> -> vector<8x128xf32>
    %cst_41 = arith.constant dense<0.000000e+00> : vector<8x128xf32>
    %208 = tpu.matmul %200, %1, %cst_41 {dimension_numbers = #tpu.dot_dimension_numbers<[1], [0], [0], [1], [0, 0, 1, 1], [], []>} : vector<8x32xf32>, vector<32x128xf32>, vector<8x128xf32> -> vector<8x128xf32>
    %209 = arith.addf %207, %208 : vector<8x128xf32>
    %210 = vector.broadcast %2 : vector<1x128xf32> to vector<8x128xf32>
    %211 = arith.addf %209, %210 : vector<8x128xf32>
    %212 = math.tanh %211 : vector<8x128xf32>
    %213 = arith.negf %211 : vector<8x128xf32>
    %214 = math.exp %213 : vector<8x128xf32>
    %cst_42 = arith.constant 1.000000e+00 : f32
    %215 = vector.broadcast %cst_42 : f32 to vector<8x128xf32>
    %216 = arith.addf %215, %214 : vector<8x128xf32>
    %217 = arith.divf %215, %216 : vector<8x128xf32>
    %218 = arith.select %9, %212, %217 : vector<8x128xi1>, vector<8x128xf32>
    %219 = vector.extract_strided_slice %218 {offsets = [0, 0], sizes = [8, 32], strides = [1, 1]} : vector<8x128xf32> to vector<8x32xf32>
    %220 = vector.extract_strided_slice %218 {offsets = [0, 32], sizes = [8, 32], strides = [1, 1]} : vector<8x128xf32> to vector<8x32xf32>
    %221 = vector.extract_strided_slice %218 {offsets = [0, 64], sizes = [8, 32], strides = [1, 1]} : vector<8x128xf32> to vector<8x32xf32>
    %222 = vector.extract_strided_slice %218 {offsets = [0, 96], sizes = [8, 32], strides = [1, 1]} : vector<8x128xf32> to vector<8x32xf32>
    %223 = arith.mulf %220, %203 : vector<8x32xf32>
    %224 = arith.mulf %219, %221 : vector<8x32xf32>
    %225 = arith.addf %223, %224 : vector<8x32xf32>
    %226 = math.tanh %225 : vector<8x32xf32>
    %227 = arith.mulf %222, %226 : vector<8x32xf32>
    %228 = vector.broadcast %c6_i32 : i32 to vector<8x1xi32>
    %229 = arith.cmpi slt, %228, %3 : vector<8x1xi32>
    %230 = vector.shape_cast %229 : vector<8x1xi1> to vector<8x1xi1>
    %231 = vector.broadcast %230 : vector<8x1xi1> to vector<8x32xi1>
    %232 = arith.select %231, %227, %200 : vector<8x32xi1>, vector<8x32xf32>
    %233 = vector.shape_cast %229 : vector<8x1xi1> to vector<8x1xi1>
    %234 = vector.broadcast %233 : vector<8x1xi1> to vector<8x32xi1>
    %235 = arith.select %234, %225, %203 : vector<8x32xi1>, vector<8x32xf32>
    %c7_i32 = arith.constant 7 : i32
    %236 = arith.index_cast %c7_i32 : i32 to index
    %c0_43 = arith.constant 0 : index
    %c0_44 = arith.constant 0 : index
    %237 = vector.load %arg0[%236, %c0_43, %c0_44] : memref<8x8x5xf32, #tpu.memory_space<vmem>>, vector<1x8x5xf32>
    %238 = vector.shape_cast %237 : vector<1x8x5xf32> to vector<8x5xf32>
    %cst_45 = arith.constant dense<0.000000e+00> : vector<8x128xf32>
    %239 = tpu.matmul %238, %0, %cst_45 {dimension_numbers = #tpu.dot_dimension_numbers<[1], [0], [0], [1], [0, 0, 1, 1], [], []>} : vector<8x5xf32>, vector<5x128xf32>, vector<8x128xf32> -> vector<8x128xf32>
    %cst_46 = arith.constant dense<0.000000e+00> : vector<8x128xf32>
    %240 = tpu.matmul %232, %1, %cst_46 {dimension_numbers = #tpu.dot_dimension_numbers<[1], [0], [0], [1], [0, 0, 1, 1], [], []>} : vector<8x32xf32>, vector<32x128xf32>, vector<8x128xf32> -> vector<8x128xf32>
    %241 = arith.addf %239, %240 : vector<8x128xf32>
    %242 = vector.broadcast %2 : vector<1x128xf32> to vector<8x128xf32>
    %243 = arith.addf %241, %242 : vector<8x128xf32>
    %244 = math.tanh %243 : vector<8x128xf32>
    %245 = arith.negf %243 : vector<8x128xf32>
    %246 = math.exp %245 : vector<8x128xf32>
    %cst_47 = arith.constant 1.000000e+00 : f32
    %247 = vector.broadcast %cst_47 : f32 to vector<8x128xf32>
    %248 = arith.addf %247, %246 : vector<8x128xf32>
    %249 = arith.divf %247, %248 : vector<8x128xf32>
    %250 = arith.select %9, %244, %249 : vector<8x128xi1>, vector<8x128xf32>
    %251 = vector.extract_strided_slice %250 {offsets = [0, 0], sizes = [8, 32], strides = [1, 1]} : vector<8x128xf32> to vector<8x32xf32>
    %252 = vector.extract_strided_slice %250 {offsets = [0, 32], sizes = [8, 32], strides = [1, 1]} : vector<8x128xf32> to vector<8x32xf32>
    %253 = vector.extract_strided_slice %250 {offsets = [0, 64], sizes = [8, 32], strides = [1, 1]} : vector<8x128xf32> to vector<8x32xf32>
    %254 = vector.extract_strided_slice %250 {offsets = [0, 96], sizes = [8, 32], strides = [1, 1]} : vector<8x128xf32> to vector<8x32xf32>
    %255 = arith.mulf %252, %235 : vector<8x32xf32>
    %256 = arith.mulf %251, %253 : vector<8x32xf32>
    %257 = arith.addf %255, %256 : vector<8x32xf32>
    %258 = math.tanh %257 : vector<8x32xf32>
    %259 = arith.mulf %254, %258 : vector<8x32xf32>
    %260 = vector.broadcast %c7_i32 : i32 to vector<8x1xi32>
    %261 = arith.cmpi slt, %260, %3 : vector<8x1xi32>
    %262 = vector.shape_cast %261 : vector<8x1xi1> to vector<8x1xi1>
    %263 = vector.broadcast %262 : vector<8x1xi1> to vector<8x32xi1>
    %264 = arith.select %263, %259, %232 : vector<8x32xi1>, vector<8x32xf32>
    %265 = vector.shape_cast %261 : vector<8x1xi1> to vector<8x1xi1>
    %266 = vector.broadcast %265 : vector<8x1xi1> to vector<8x32xi1>
    %267 = arith.select %266, %257, %235 : vector<8x32xi1>, vector<8x32xf32>
    %c8_i32 = arith.constant 8 : i32
    %c0_48 = arith.constant 0 : index
    %c0_49 = arith.constant 0 : index
    %268 = vector.load %arg5[%c0_48, %c0_49] : memref<1x32xf32, #tpu.memory_space<vmem>>, vector<1x32xf32>
    %c0_50 = arith.constant 0 : index
    %c0_51 = arith.constant 0 : index
    %269 = vector.load %arg6[%c0_50, %c0_51] : memref<1x32xf32, #tpu.memory_space<vmem>>, vector<1x32xf32>
    %cst_52 = arith.constant dense<0.000000e+00> : vector<8xf32>
    %270 = vector.multi_reduction <add>, %264, %cst_52 [1] : vector<8x32xf32> to vector<8xf32>
    %271 = vector.shape_cast %270 : vector<8xf32> to vector<8x1xf32>
    %cst_53 = arith.constant 3.200000e+01 : f32
    %272 = vector.broadcast %cst_53 : f32 to vector<8x1xf32>
    %273 = arith.divf %271, %272 : vector<8x1xf32>
    %274 = vector.broadcast %273 : vector<8x1xf32> to vector<8x32xf32>
    %275 = arith.subf %264, %274 : vector<8x32xf32>
    %276 = arith.mulf %275, %275 : vector<8x32xf32>
    %cst_54 = arith.constant dense<0.000000e+00> : vector<8xf32>
    %277 = vector.multi_reduction <add>, %276, %cst_54 [1] : vector<8x32xf32> to vector<8xf32>
    %278 = vector.shape_cast %277 : vector<8xf32> to vector<8x1xf32>
    %cst_55 = arith.constant 3.200000e+01 : f32
    %279 = vector.broadcast %cst_55 : f32 to vector<8x1xf32>
    %280 = arith.divf %278, %279 : vector<8x1xf32>
    %281 = vector.broadcast %273 : vector<8x1xf32> to vector<8x32xf32>
    %282 = arith.subf %264, %281 : vector<8x32xf32>
    %cst_56 = arith.constant 9.99999974E-6 : f32
    %283 = vector.broadcast %cst_56 : f32 to vector<8x1xf32>
    %284 = arith.addf %280, %283 : vector<8x1xf32>
    %285 = math.rsqrt %284 : vector<8x1xf32>
    %286 = vector.broadcast %285 : vector<8x1xf32> to vector<8x32xf32>
    %287 = arith.mulf %282, %286 : vector<8x32xf32>
    %288 = vector.broadcast %268 : vector<1x32xf32> to vector<8x32xf32>
    %289 = arith.mulf %287, %288 : vector<8x32xf32>
    %290 = vector.broadcast %269 : vector<1x32xf32> to vector<8x32xf32>
    %291 = arith.addf %289, %290 : vector<8x32xf32>
    %c0_57 = arith.constant 0 : index
    %c0_58 = arith.constant 0 : index
    %292 = vector.load %arg7[%c0_57, %c0_58] : memref<8x4xf32, #tpu.memory_space<vmem>>, vector<8x4xf32>
    %cst_59 = arith.constant -0.105360515 : f32
    %293 = vector.broadcast %cst_59 : f32 to vector<8x4xf32>
    %294 = arith.mulf %292, %293 : vector<8x4xf32>
    %295 = math.exp %294 : vector<8x4xf32>
    %296 = vector.extract_strided_slice %295 {offsets = [0, 0], sizes = [8, 1], strides = [1, 1]} : vector<8x4xf32> to vector<8x1xf32>
    %c0_60 = arith.constant 0 : index
    %c0_61 = arith.constant 0 : index
    %c0_62 = arith.constant 0 : index
    %297 = vector.load %arg8[%c0_60, %c0_61, %c0_62] : memref<4x8x768xf32, #tpu.memory_space<vmem>>, vector<1x8x768xf32>
    %298 = vector.shape_cast %297 : vector<1x8x768xf32> to vector<8x768xf32>
    %299 = vector.broadcast %296 : vector<8x1xf32> to vector<8x768xf32>
    %300 = arith.mulf %299, %298 : vector<8x768xf32>
    %301 = vector.extract_strided_slice %295 {offsets = [0, 1], sizes = [8, 1], strides = [1, 1]} : vector<8x4xf32> to vector<8x1xf32>
    %c1 = arith.constant 1 : index
    %c0_63 = arith.constant 0 : index
    %c0_64 = arith.constant 0 : index
    %302 = vector.load %arg8[%c1, %c0_63, %c0_64] : memref<4x8x768xf32, #tpu.memory_space<vmem>>, vector<1x8x768xf32>
    %303 = vector.shape_cast %302 : vector<1x8x768xf32> to vector<8x768xf32>
    %304 = vector.broadcast %301 : vector<8x1xf32> to vector<8x768xf32>
    %305 = arith.mulf %304, %303 : vector<8x768xf32>
    %306 = arith.addf %300, %305 : vector<8x768xf32>
    %307 = vector.extract_strided_slice %295 {offsets = [0, 2], sizes = [8, 1], strides = [1, 1]} : vector<8x4xf32> to vector<8x1xf32>
    %c2 = arith.constant 2 : index
    %c0_65 = arith.constant 0 : index
    %c0_66 = arith.constant 0 : index
    %308 = vector.load %arg8[%c2, %c0_65, %c0_66] : memref<4x8x768xf32, #tpu.memory_space<vmem>>, vector<1x8x768xf32>
    %309 = vector.shape_cast %308 : vector<1x8x768xf32> to vector<8x768xf32>
    %310 = vector.broadcast %307 : vector<8x1xf32> to vector<8x768xf32>
    %311 = arith.mulf %310, %309 : vector<8x768xf32>
    %312 = arith.addf %306, %311 : vector<8x768xf32>
    %313 = vector.extract_strided_slice %295 {offsets = [0, 3], sizes = [8, 1], strides = [1, 1]} : vector<8x4xf32> to vector<8x1xf32>
    %c3 = arith.constant 3 : index
    %c0_67 = arith.constant 0 : index
    %c0_68 = arith.constant 0 : index
    %314 = vector.load %arg8[%c3, %c0_67, %c0_68] : memref<4x8x768xf32, #tpu.memory_space<vmem>>, vector<1x8x768xf32>
    %315 = vector.shape_cast %314 : vector<1x8x768xf32> to vector<8x768xf32>
    %316 = vector.broadcast %313 : vector<8x1xf32> to vector<8x768xf32>
    %317 = arith.mulf %316, %315 : vector<8x768xf32>
    %318 = arith.addf %312, %317 : vector<8x768xf32>
    %c0_69 = arith.constant 0 : index
    %c0_70 = arith.constant 0 : index
    %319 = vector.load %arg9[%c0_69, %c0_70] : memref<8x8xf32, #tpu.memory_space<vmem>>, vector<8x8xf32>
    %c0_71 = arith.constant 0 : index
    %c0_72 = arith.constant 0 : index
    %320 = vector.load %arg10[%c0_71, %c0_72] : memref<32x256xf32, #tpu.memory_space<vmem>>, vector<32x256xf32>
    %cst_73 = arith.constant dense<0.000000e+00> : vector<8x256xf32>
    %321 = tpu.matmul %291, %320, %cst_73 {dimension_numbers = #tpu.dot_dimension_numbers<[1], [0], [0], [1], [0, 0, 1, 1], [], []>} : vector<8x32xf32>, vector<32x256xf32>, vector<8x256xf32> -> vector<8x256xf32>
    %c0_74 = arith.constant 0 : index
    %c0_75 = arith.constant 0 : index
    %322 = vector.load %arg11[%c0_74, %c0_75] : memref<768x256xf32, #tpu.memory_space<vmem>>, vector<768x256xf32>
    %cst_76 = arith.constant dense<0.000000e+00> : vector<8x256xf32>
    %323 = tpu.matmul %318, %322, %cst_76 {dimension_numbers = #tpu.dot_dimension_numbers<[1], [0], [0], [1], [0, 0, 1, 1], [], []>} : vector<8x768xf32>, vector<768x256xf32>, vector<8x256xf32> -> vector<8x256xf32>
    %324 = arith.addf %321, %323 : vector<8x256xf32>
    %c0_77 = arith.constant 0 : index
    %c0_78 = arith.constant 0 : index
    %325 = vector.load %arg12[%c0_77, %c0_78] : memref<8x256xf32, #tpu.memory_space<vmem>>, vector<8x256xf32>
    %cst_79 = arith.constant dense<0.000000e+00> : vector<8x256xf32>
    %326 = tpu.matmul %319, %325, %cst_79 {dimension_numbers = #tpu.dot_dimension_numbers<[1], [0], [0], [1], [0, 0, 1, 1], [], []>} : vector<8x8xf32>, vector<8x256xf32>, vector<8x256xf32> -> vector<8x256xf32>
    %327 = arith.addf %324, %326 : vector<8x256xf32>
    %c0_80 = arith.constant 0 : index
    %c0_81 = arith.constant 0 : index
    %328 = vector.load %arg13[%c0_80, %c0_81] : memref<1x256xf32, #tpu.memory_space<vmem>>, vector<1x256xf32>
    %329 = vector.broadcast %328 : vector<1x256xf32> to vector<8x256xf32>
    %330 = arith.addf %327, %329 : vector<8x256xf32>
    %c0_82 = arith.constant 0 : index
    %c0_83 = arith.constant 0 : index
    %331 = vector.load %arg14[%c0_82, %c0_83] : memref<1x256xf32, #tpu.memory_space<vmem>>, vector<1x256xf32>
    %c0_84 = arith.constant 0 : index
    %c0_85 = arith.constant 0 : index
    %332 = vector.load %arg15[%c0_84, %c0_85] : memref<1x256xf32, #tpu.memory_space<vmem>>, vector<1x256xf32>
    %cst_86 = arith.constant dense<0.000000e+00> : vector<8xf32>
    %333 = vector.multi_reduction <add>, %330, %cst_86 [1] : vector<8x256xf32> to vector<8xf32>
    %334 = vector.shape_cast %333 : vector<8xf32> to vector<8x1xf32>
    %cst_87 = arith.constant 2.560000e+02 : f32
    %335 = vector.broadcast %cst_87 : f32 to vector<8x1xf32>
    %336 = arith.divf %334, %335 : vector<8x1xf32>
    %337 = vector.broadcast %336 : vector<8x1xf32> to vector<8x256xf32>
    %338 = arith.subf %330, %337 : vector<8x256xf32>
    %339 = arith.mulf %338, %338 : vector<8x256xf32>
    %cst_88 = arith.constant dense<0.000000e+00> : vector<8xf32>
    %340 = vector.multi_reduction <add>, %339, %cst_88 [1] : vector<8x256xf32> to vector<8xf32>
    %341 = vector.shape_cast %340 : vector<8xf32> to vector<8x1xf32>
    %cst_89 = arith.constant 2.560000e+02 : f32
    %342 = vector.broadcast %cst_89 : f32 to vector<8x1xf32>
    %343 = arith.divf %341, %342 : vector<8x1xf32>
    %344 = vector.broadcast %336 : vector<8x1xf32> to vector<8x256xf32>
    %345 = arith.subf %330, %344 : vector<8x256xf32>
    %cst_90 = arith.constant 9.99999974E-6 : f32
    %346 = vector.broadcast %cst_90 : f32 to vector<8x1xf32>
    %347 = arith.addf %343, %346 : vector<8x1xf32>
    %348 = math.rsqrt %347 : vector<8x1xf32>
    %349 = vector.broadcast %348 : vector<8x1xf32> to vector<8x256xf32>
    %350 = arith.mulf %345, %349 : vector<8x256xf32>
    %351 = vector.broadcast %331 : vector<1x256xf32> to vector<8x256xf32>
    %352 = arith.mulf %350, %351 : vector<8x256xf32>
    %353 = vector.broadcast %332 : vector<1x256xf32> to vector<8x256xf32>
    %354 = arith.addf %352, %353 : vector<8x256xf32>
    %cst_91 = arith.constant 0.000000e+00 : f32
    %355 = vector.broadcast %cst_91 : f32 to vector<8x256xf32>
    %356 = arith.maximumf %354, %355 : vector<8x256xf32>
    %c0_92 = arith.constant 0 : index
    %c0_93 = arith.constant 0 : index
    %357 = vector.load %arg16[%c0_92, %c0_93] : memref<256x128xf32, #tpu.memory_space<vmem>>, vector<256x128xf32>
    %cst_94 = arith.constant dense<0.000000e+00> : vector<8x128xf32>
    %358 = tpu.matmul %356, %357, %cst_94 {dimension_numbers = #tpu.dot_dimension_numbers<[1], [0], [0], [1], [0, 0, 1, 1], [], []>} : vector<8x256xf32>, vector<256x128xf32>, vector<8x128xf32> -> vector<8x128xf32>
    %c0_95 = arith.constant 0 : index
    %c0_96 = arith.constant 0 : index
    %359 = vector.load %arg17[%c0_95, %c0_96] : memref<1x128xf32, #tpu.memory_space<vmem>>, vector<1x128xf32>
    %360 = vector.broadcast %359 : vector<1x128xf32> to vector<8x128xf32>
    %361 = arith.addf %358, %360 : vector<8x128xf32>
    %c0_97 = arith.constant 0 : index
    %c0_98 = arith.constant 0 : index
    %362 = vector.load %arg18[%c0_97, %c0_98] : memref<1x128xf32, #tpu.memory_space<vmem>>, vector<1x128xf32>
    %c0_99 = arith.constant 0 : index
    %c0_100 = arith.constant 0 : index
    %363 = vector.load %arg19[%c0_99, %c0_100] : memref<1x128xf32, #tpu.memory_space<vmem>>, vector<1x128xf32>
    %cst_101 = arith.constant dense<0.000000e+00> : vector<8xf32>
    %364 = vector.multi_reduction <add>, %361, %cst_101 [1] : vector<8x128xf32> to vector<8xf32>
    %365 = vector.shape_cast %364 : vector<8xf32> to vector<8x1xf32>
    %cst_102 = arith.constant 1.280000e+02 : f32
    %366 = vector.broadcast %cst_102 : f32 to vector<8x1xf32>
    %367 = arith.divf %365, %366 : vector<8x1xf32>
    %368 = vector.broadcast %367 : vector<8x1xf32> to vector<8x128xf32>
    %369 = arith.subf %361, %368 : vector<8x128xf32>
    %370 = arith.mulf %369, %369 : vector<8x128xf32>
    %cst_103 = arith.constant dense<0.000000e+00> : vector<8xf32>
    %371 = vector.multi_reduction <add>, %370, %cst_103 [1] : vector<8x128xf32> to vector<8xf32>
    %372 = vector.shape_cast %371 : vector<8xf32> to vector<8x1xf32>
    %cst_104 = arith.constant 1.280000e+02 : f32
    %373 = vector.broadcast %cst_104 : f32 to vector<8x1xf32>
    %374 = arith.divf %372, %373 : vector<8x1xf32>
    %375 = vector.broadcast %367 : vector<8x1xf32> to vector<8x128xf32>
    %376 = arith.subf %361, %375 : vector<8x128xf32>
    %cst_105 = arith.constant 9.99999974E-6 : f32
    %377 = vector.broadcast %cst_105 : f32 to vector<8x1xf32>
    %378 = arith.addf %374, %377 : vector<8x1xf32>
    %379 = math.rsqrt %378 : vector<8x1xf32>
    %380 = vector.broadcast %379 : vector<8x1xf32> to vector<8x128xf32>
    %381 = arith.mulf %376, %380 : vector<8x128xf32>
    %382 = vector.broadcast %362 : vector<1x128xf32> to vector<8x128xf32>
    %383 = arith.mulf %381, %382 : vector<8x128xf32>
    %384 = vector.broadcast %363 : vector<1x128xf32> to vector<8x128xf32>
    %385 = arith.addf %383, %384 : vector<8x128xf32>
    %cst_106 = arith.constant 0.000000e+00 : f32
    %386 = vector.broadcast %cst_106 : f32 to vector<8x128xf32>
    %387 = arith.maximumf %385, %386 : vector<8x128xf32>
    %c0_107 = arith.constant 0 : index
    %c0_108 = arith.constant 0 : index
    %388 = vector.load %arg20[%c0_107, %c0_108] : memref<128x64xf32, #tpu.memory_space<vmem>>, vector<128x64xf32>
    %cst_109 = arith.constant dense<0.000000e+00> : vector<8x64xf32>
    %389 = tpu.matmul %387, %388, %cst_109 {dimension_numbers = #tpu.dot_dimension_numbers<[1], [0], [0], [1], [0, 0, 1, 1], [], []>} : vector<8x128xf32>, vector<128x64xf32>, vector<8x64xf32> -> vector<8x64xf32>
    %c0_110 = arith.constant 0 : index
    %c0_111 = arith.constant 0 : index
    %390 = vector.load %arg21[%c0_110, %c0_111] : memref<1x64xf32, #tpu.memory_space<vmem>>, vector<1x64xf32>
    %391 = vector.broadcast %390 : vector<1x64xf32> to vector<8x64xf32>
    %392 = arith.addf %389, %391 : vector<8x64xf32>
    %c0_112 = arith.constant 0 : index
    %c0_113 = arith.constant 0 : index
    %393 = vector.load %arg22[%c0_112, %c0_113] : memref<1x64xf32, #tpu.memory_space<vmem>>, vector<1x64xf32>
    %c0_114 = arith.constant 0 : index
    %c0_115 = arith.constant 0 : index
    %394 = vector.load %arg23[%c0_114, %c0_115] : memref<1x64xf32, #tpu.memory_space<vmem>>, vector<1x64xf32>
    %cst_116 = arith.constant dense<0.000000e+00> : vector<8xf32>
    %395 = vector.multi_reduction <add>, %392, %cst_116 [1] : vector<8x64xf32> to vector<8xf32>
    %396 = vector.shape_cast %395 : vector<8xf32> to vector<8x1xf32>
    %cst_117 = arith.constant 6.400000e+01 : f32
    %397 = vector.broadcast %cst_117 : f32 to vector<8x1xf32>
    %398 = arith.divf %396, %397 : vector<8x1xf32>
    %399 = vector.broadcast %398 : vector<8x1xf32> to vector<8x64xf32>
    %400 = arith.subf %392, %399 : vector<8x64xf32>
    %401 = arith.mulf %400, %400 : vector<8x64xf32>
    %cst_118 = arith.constant dense<0.000000e+00> : vector<8xf32>
    %402 = vector.multi_reduction <add>, %401, %cst_118 [1] : vector<8x64xf32> to vector<8xf32>
    %403 = vector.shape_cast %402 : vector<8xf32> to vector<8x1xf32>
    %cst_119 = arith.constant 6.400000e+01 : f32
    %404 = vector.broadcast %cst_119 : f32 to vector<8x1xf32>
    %405 = arith.divf %403, %404 : vector<8x1xf32>
    %406 = vector.broadcast %398 : vector<8x1xf32> to vector<8x64xf32>
    %407 = arith.subf %392, %406 : vector<8x64xf32>
    %cst_120 = arith.constant 9.99999974E-6 : f32
    %408 = vector.broadcast %cst_120 : f32 to vector<8x1xf32>
    %409 = arith.addf %405, %408 : vector<8x1xf32>
    %410 = math.rsqrt %409 : vector<8x1xf32>
    %411 = vector.broadcast %410 : vector<8x1xf32> to vector<8x64xf32>
    %412 = arith.mulf %407, %411 : vector<8x64xf32>
    %413 = vector.broadcast %393 : vector<1x64xf32> to vector<8x64xf32>
    %414 = arith.mulf %412, %413 : vector<8x64xf32>
    %415 = vector.broadcast %394 : vector<1x64xf32> to vector<8x64xf32>
    %416 = arith.addf %414, %415 : vector<8x64xf32>
    %cst_121 = arith.constant 0.000000e+00 : f32
    %417 = vector.broadcast %cst_121 : f32 to vector<8x64xf32>
    %418 = arith.maximumf %416, %417 : vector<8x64xf32>
    %c0_122 = arith.constant 0 : index
    %c0_123 = arith.constant 0 : index
    %419 = vector.load %arg24[%c0_122, %c0_123] : memref<64x128xf32, #tpu.memory_space<vmem>>, vector<64x128xf32>
    %cst_124 = arith.constant dense<0.000000e+00> : vector<8x128xf32>
    %420 = tpu.matmul %418, %419, %cst_124 {dimension_numbers = #tpu.dot_dimension_numbers<[1], [0], [0], [1], [0, 0, 1, 1], [], []>} : vector<8x64xf32>, vector<64x128xf32>, vector<8x128xf32> -> vector<8x128xf32>
    %c0_125 = arith.constant 0 : index
    %c0_126 = arith.constant 0 : index
    %421 = vector.load %arg25[%c0_125, %c0_126] : memref<1x128xf32, #tpu.memory_space<vmem>>, vector<1x128xf32>
    %422 = vector.broadcast %421 : vector<1x128xf32> to vector<8x128xf32>
    %423 = arith.addf %420, %422 : vector<8x128xf32>
    %c0_127 = arith.constant 0 : index
    %c0_128 = arith.constant 0 : index
    %424 = vector.load %arg26[%c0_127, %c0_128] : memref<8x128xf32, #tpu.memory_space<vmem>>, vector<8x128xf32>
    tpu.vector_store %arg26[%c0_127, %c0_128], %423 {strides = array<i32>} : memref<8x128xf32, #tpu.memory_space<vmem>>, vector<8x128xf32>,
    return
  }
}

</mosaic_0001>

<bundles_post_ra>
// kernel: losnet_forward.1
= control target key start
LH: loop header
LB: loop body
LE: loop exit
PB: predicated region body
PF: predicated region fallthrough
CT: control target
= control target key end

     0   :  { %s4307_s0 = inlined_call_operand.vmem [shape: f32[8,8,5], index: 0, kind: input, shape index: {}]   ;;  %s4308_s1 = inlined_call_operand.vmem [shape: s32[8,1], index: 1, kind: input, shape index: {}]   ;;  %s4309_s2 = inlined_call_operand.vmem [shape: f32[5,128], index: 2, kind: input, shape index: {}]   ;;  %s4310_s3 = inlined_call_operand.vmem [shape: f32[32,128], index: 3, kind: input, shape index: {}]   ;;  %s4311_s4 = inlined_call_operand.vmem [shape: f32[1,128], index: 4, kind: input, shape index: {}]   ;;  %s4312_s5 = inlined_call_operand.vmem [shape: f32[1,32], index: 5, kind: input, shape index: {}]   ;;  %s4313_s6 = inlined_call_operand.vmem [shape: f32[1,32], index: 6, kind: input, shape index: {}]   ;;  %s4314_s7 = inlined_call_operand.vmem [shape: f32[8,4], index: 7, kind: input, shape index: {}]   ;;  %s4315_s8 = inlined_call_operand.vmem [shape: f32[4,8,768], index: 8, kind: input, shape index: {}]   ;;  %s4316_s9 = inlined_call_operand.vmem [shape: f32[8,8], index: 9, kind: input, shape index: {}]   ;;  %s4317_s10 = inlined_call_operand.vmem [shape: f32[32,256], index: 10, kind: input, shape index: {}]   ;;  %s4318_s11 = inlined_call_operand.hbm [shape: f32[768,256], index: 11, kind: input, shape index: {}]   ;;  %s4319_s12 = inlined_call_operand.vmem [shape: f32[8,256], index: 12, kind: input, shape index: {}]   ;;  %s4320_s13 = inlined_call_operand.vmem [shape: f32[1,256], index: 13, kind: input, shape index: {}]   ;;  %s4321_s14 = inlined_call_operand.vmem [shape: f32[1,256], index: 14, kind: input, shape index: {}]   ;;  %s4322_s15 = inlined_call_operand.vmem [shape: f32[1,256], index: 15, kind: input, shape index: {}]   ;;  %s4323_s16 = inlined_call_operand.vmem [shape: f32[256,128], index: 16, kind: input, shape index: {}]   ;;  %s4324_s17 = inlined_call_operand.vmem [shape: f32[1,128], index: 17, kind: input, shape index: {}]   ;;  %s4325_s18 = inlined_call_operand.vmem [shape: f32[1,128], index: 18, kind: input, shape index: {}]   ;;  %s4326_s19 = inlined_call_operand.vmem [shape: f32[1,128], index: 19, kind: input, shape index: {}]   ;;  %s4327_s20 = inlined_call_operand.vmem [shape: f32[128,64], index: 20, kind: input, shape index: {}]   ;;  %s4328_s21 = inlined_call_operand.vmem [shape: f32[1,64], index: 21, kind: input, shape index: {}]   ;;  %s4329_s22 = inlined_call_operand.vmem [shape: f32[1,64], index: 22, kind: input, shape index: {}]   ;;  %s4330_s23 = inlined_call_operand.vmem [shape: f32[1,64], index: 23, kind: input, shape index: {}]   ;;  %s4331_s24 = inlined_call_operand.vmem [shape: f32[64,128], index: 24, kind: input, shape index: {}]   ;;  %s4332_s25 = inlined_call_operand.vmem [shape: f32[1,128], index: 25, kind: input, shape index: {}]   ;;  %s4333_s26 = inlined_call_operand.vmem [shape: f32[8,128], index: 26, kind: output, shape index: {}]  }
   0x1   :  { %4338 = sst [smem:[#allocation5_spill]] %s4307_s0 }
   0x2   :  { %4339 = sst [smem:[#allocation6_spill]] %s4308_s1 }
   0x3   :  { %4340 = sst [smem:[#allocation7_spill]] %s4309_s2 }
   0x4   :  { %4341 = sst [smem:[#allocation8_spill]] %s4310_s3 }
   0x5   :  { %4342 = sst [smem:[#allocation9_spill]] %s4311_s4 }
   0x6   :  { %4343 = sst [smem:[#allocation10_spill]] %s4312_s5 }
   0x7   :  { %4344 = sst [smem:[#allocation11_spill]] %s4313_s6 }
   0x8   :  { %4345 = sst [smem:[#allocation12_spill]] %s4314_s7 }
   0x9   :  { %4346 = sst [smem:[#allocation13_spill]] %s4315_s8 }
   0xa   :  { %4347 = sst [smem:[#allocation14_spill]] %s4316_s9 }
   0xb   :  { %4348 = sst [smem:[#allocation15_spill]] %s4317_s10 }
   0xc   :  { %31 = vsyncpa [#allocation3], 0  ;;  %s3517_s27 = smov [#allocation2]   ;;  %s3493_s8 = scalar_lea.hbm %s4318_s11, 24576 }
   0xd   :  { %s59_s3 = sshll.u32 %s3517_s27, 4  ;;  %p3494_p0 = scmp.ne.s32.totalorder %s4318_s11, %s3493_s8  ;;  %s60_s3 = int_to_ptr.vmem [resolvable:$true] %s59_s3 }
   0xe   :  { %p3497_p1 = scmp.lt.u32.totalorder %s3493_s8, %s4318_s11 }
  0x10   :  { %p3499_p2 = pnand %p3497_p1, %p3494_p0 }
  0x12   :  { %3502 = shalt.err (!%p3499_p2)
}
  0x13   :  { %s3503_s30 = scalar_lea.vmem %s60_s3, 24576  ;;  %p3508_p4 = scmp.lt.s32.totalorder %s60_s3, %s60_s3 }
  0x14   :  { %p3504_p3 = scmp.ne.s32.totalorder %s60_s3, %s3503_s30  ;;  %p3509_p5 = scmp.lt.s32.totalorder %s3503_s30, %s3503_s30 }
  0x16   :  { %p3510_p6 = por %p3509_p5, %p3508_p4 }
  0x18   :  { %p3511_p7 = pnand %p3510_p6, %p3504_p3 }
  0x1a   :  { %3514 = shalt.err (!%p3511_p7)
}
  0x1b   :  { %s3518_s2 = smov 256   ;;  %s3519_s5 = smov 16  }
  0x1c   :  { %65 = dma.hbm_to_vmem [thread:$0]  %s4318_s11, 24576, %s60_s3, [#allocation3], %s3518_s2, %s3518_s2, %s3519_s5  }
  0x1d   :  { %3515 = dma.done.wait [#allocation3], 24576  }
  0x1e   :  { %3516 = vsyncadd [#allocation3], 4294942720  ;;  %v3520_v0 = vmov 0.0|0.0   ;;  %v3521_v1 = vmov 0.0   ;;  %vm3522_vm0 = vmmov 0   ;;  %vm188_vm1 = vcmask 1044480  }
  0x1f   :  { %3076 = vmatprep.subr.bf16.mxu0 %v3520_v0  ;;  %2905 = vmatprep.subr.mxu1 %v3521_v1  ;;  %s4349_s7 = sld [smem:[#allocation8_spill]]  ;;  %vm184_vm2 = vcmask 39936   ;;  %s4350_s30 = sld [smem:[#allocation7_spill]]  ;;  %v3523_v11 = vmov 0   ;;  %v104_v22 = vlaneseq  ;;  %vm110_vm8 = vcmask 261120  }
  0x20   :  { %2907 = vmatprep.mubr.msk.f32.mxu1 %vm3522_vm0, %v3521_v1  ;;  %2902 = vmatprep.mubr.msk.f32.mxu0 %vm3522_vm0, %v3521_v1  ;;  %s4351_s10 = sld [smem:[#allocation5_spill]]  ;;  %s4352_s27 = sld [smem:[#allocation6_spill]] }
  0x21   :  { %3413 = vset.pattern.permute.xlu1 %v3523_v11  ;;  %3414 = vset.pattern.permute.xlu0 %v3523_v11  ;;  %s4353_s3 = sld [smem:[#allocation9_spill]]  ;;  %v105_v24 = vand.u32 127, %v104_v22  ;;  %s3524_s28 = smov 64  }
  0x22   :  { %s3525_s8 = smov 32   ;;  %s4356_s0 = sld [smem:[#allocation12_spill]] }
  0x23   :  { %vm106_vm4 = vcmp.ge.s32.totalorder %v105_v24, 64  ;;  %vm107_vm5 = vcmp.lt.s32.totalorder %v105_v24, 96  ;;  %s4358_s6 = sld [smem:[#allocation11_spill]]  ;;  %s3529_s1 = smov 96  }
  0x24   :  { %vm3743_vm6 = vmand %vm106_vm4, %vm107_vm5  ;;  %s4359_s11 = sld [smem:[#allocation13_spill]]  ;;  %s4361_s5 = sld [smem:[#allocation14_spill]] }
  0x25   :  { %v98_v2 = vld [vmem:[%s4349_s7] sm:$0xff]  ;;  %v99_v3 = vld [vmem:[%s4349_s7 + $0x8] sm:$0xff]  ;;  %v100_v4 = vld [vmem:[%s4349_s7 + $0x10] sm:$0xff] }
  0x26   :  { %v3692_v5 = vpack.c.bf16 %v99_v3, %v98_v2  ;;  %v101_v6 = vld [vmem:[%s4349_s7 + $0x18] sm:$0xff]  ;;  %v3700_v7 = vld [vmem:[%s4350_s30] sm:$0x1f]  ;;  %v2712_v40 = vld [vmem:[%s4351_s10 + $0x8] sm:$0xff]  ;;  %s4357_s30 = sld [smem:[#allocation10_spill]] }
  0x27   :  { %v109_v8 = vld [vmem:[%s4351_s10] sm:$0xff]  ;;  %2906 = vmatpush3.msk.msra.mxu1 %vm188_vm1, %v3700_v7  ;;  %v3708_v9 = vpack.c.bf16 %v101_v6, %v100_v4  ;;  %v2717_v60 = vld [vmem:[%s4351_s10 + $0x10] sm:$0xff] }
  0x28   :  { %3078 = vmatpush3.bf16.msra.mxu0 %v3692_v5  ;;  %2908 = vmatmul.mubr.msk.f32.vlgmr.msra.gmra.mrb[0].mxu1 %vm184_vm2, %v109_v8  ;;  %v3730_v10 = vld [vmem:[%s4352_s27] sm:$0xff] }
  0x29   :  { %3079 = vmatprep.subr.bf16.mxu0 %v3520_v0  ;;  %3082 = vmatprep.subr.bf16.mxu1 %v3520_v0  ;;  %vm294_vm3 = vcmp.gt.s32.totalorder %v3730_v10, 0  ;;  %v3739_v15 = vld [vmem:[%s4353_s3] ss:$0 sm:$0xff]  ;;  %vm478_vm9 = vcmp.gt.s32.totalorder %v3730_v10, 1  ;;  %vm662_vm11 = vcmp.gt.s32.totalorder %v3730_v10, 2  ;;  %vm846_vm13 = vcmp.gt.s32.totalorder %v3730_v10, 3 }
  0x2a   :  { %3084 = vmatpush3.bf16.msra.mxu1 %v3692_v5  ;;  %2918 = vmatprep.mubr.msk.f32.mxu1 %vm3522_vm0, %v3521_v1  ;;  %v295_v12 = vsel %vm294_vm3, 1, %v3523_v11  ;;  %v479_v53 = vsel %vm478_vm9, 1, %v3523_v11  ;;  %v663_v24 = vsel %vm662_vm11, 1, %v3523_v11  ;;  %vm1030_vm15 = vcmp.gt.s32.totalorder %v3730_v10, 4 }
  0x2b   :  { %3085 = vmatprep.subr.bf16.mxu1 %v3520_v0  ;;  %297 = vperm.xlu1 %3413, %v295_v12   ;;  %vm1214_vm4 = vcmp.gt.s32.totalorder %v3730_v10, 5  ;;  %vm2213_vm9 = vcmask 64512  }
  0x2c   :  { %3081 = vmatpush3.bf16.msra.mxu0 %v3708_v9 }
  0x2d   :  { %2937 = vmatprep.subr.mxu0 %v3521_v1 }
  0x2e   :  { %3087 = vmatpush3.bf16.msra.mxu1 %v3708_v9 }
  0x2f   :  { %2903 = vmatmul.mubr.f32.vlgmr.msra.gmra.mrb[0].mxu0 %v3521_v1  ;;  %2921 = vmatprep.subr.mxu1 %v3521_v1 }
  0x30   :  { %2938 = vmatpush3.msk.msra.mxu0 %vm188_vm1, %v3700_v7  ;;  %2939 = vmatprep.mubr.msk.f32.mxu0 %vm3522_vm0, %v3521_v1 }
  0x31   :  { %3094 = vmatprep.subr.bf16.mxu0 %v3520_v0 }
  0x33   :  { %2940 = vmatmul.mubr.msk.f32.vlgmr.msra.gmra.mrb[2].mxu0 %vm184_vm2, %v2717_v60 }
  0x34   :  { %3096 = vmatpush3.bf16.msra.mxu0 %v3692_v5  ;;  %2950 = vmatprep.mubr.msk.f32.mxu0 %vm3522_vm0, %v3521_v1 }
  0x35   :  { %3097 = vmatprep.subr.bf16.mxu0 %v3520_v0 }
  0x38   :  { %3099 = vmatpush3.bf16.msra.mxu0 %v3708_v9 }
  0x39   :  { %2969 = vmatprep.subr.mxu0 %v3521_v1 }
  0xaa   :  { %v298_v35 = vpop.permute.xlu1 %297 }
  0xab   :  { %vm299_vm7 = vcmp.eq.s32.totalorder %v298_v35, 1 }
  0xfb   :  { %v258_v13 = vpop.f32.mrb[0].mxu1 }
  0xfc   :  { %v2909_v14 = vpop.f32.mrb[1].mxu1 }
 0x102   :  { %v180_v16 = vpop.f32.mrb[0].mxu0 }
 0x103   :  { %v259_v17 = vadd.f32 %v258_v13, %v180_v16  ;;  %v2904_v18 = vpop.f32.mrb[1].mxu0 }
 0x105   :  { %v268_v19 = vadd.f32 %v3739_v15, %v259_v17 }
 0x106   :  { %v632_v4 = vpop.f32.mrb[2].mxu0 }
 0x107   :  { %v2711_v20 = vmul.f32 -1.442695, %v268_v19  ;;  %v2941_v6 = vpop.f32.mrb[3].mxu0 }
 0x109   :  { %3419 = vpow2.f32 %v2711_v20 }
 0x10a   :  { %3421 = vtanh.f32 %v268_v19 }
 0x113   :  { %v3420_v21 = vpop.eup %3419 }
 0x114   :  { %v273_v23 = vadd.f32 1.0, %v3420_v21  ;;  %v3422_v26 = vpop.eup %3421 }
 0x116   :  { %3423 = vrcp.f32 %v273_v23 }
 0x120   :  { %v3424_v27 = vpop.eup %3423 }
 0x121   :  { %v276_v28 = vsel %vm3743_vm6, %v3422_v26, %v3424_v27 }
 0x122   :  { %279 = vrot.lane.b32.xlu0 %v276_v28, %s3524_s28  ;;  %v277_v31 = vmul.f32 0.0, %v276_v28 }
 0x194   :  { %v280_v29 = vpop.permute.xlu0 %279 }
 0x195   :  { %v282_v30 = vmul.f32 %v280_v29, %v276_v28 }
 0x197   :  { %284 = vrot.lane.b32.xlu0 %v282_v30, %s3525_s8 }
 0x209   :  { %v285_v32 = vpop.permute.xlu0 %284 }
 0x20a   :  { %v287_v33 = vadd.f32 %v285_v32, %v277_v31  ;;  %v2722_v32 = vld [vmem:[%s4351_s10 + $0x18] sm:$0xff] }
 0x20c   :  { %3425 = vtanh.f32 %v287_v33  ;;  %v301_v56 = vsel %vm299_vm7, %v287_v33, 0.0 }
 0x216   :  { %v3426_v34 = vpop.eup %3425 }
 0x217   :  { %290 = vrot.lane.b32.xlu1 %v3426_v34, %s3524_s28 }
 0x289   :  { %v291_v36 = vpop.permute.xlu1 %290 }
 0x28a   :  { %v293_v37 = vmul.f32 %v291_v36, %v276_v28 }
 0x28c   :  { %v300_v38 = vsel %vm299_vm7, %v293_v37, 0.0  ;;  %vm1398_vm7 = vcmp.gt.s32.totalorder %v3730_v10, 6 }
 0x28d   :  { %305 = vrot.lane.b32.xlu0 %v300_v38, %s3525_s8 }
 0x2ff   :  { %v306_v39 = vpop.permute.xlu0 %305 }
 0x300   :  { %2919 = vmatmul.mubr.msk.f32.vlgmr.msra.gmra.mrb[2].mxu1 %vm110_vm8, %v306_v39 }
 0x301   :  { %2922 = vmatpush3.msk.msra.mxu1 %vm188_vm1, %v3700_v7  ;;  %2923 = vmatprep.mubr.msk.f32.mxu1 %vm3522_vm0, %v3521_v1 }
 0x302   :  { %3088 = vmatprep.subr.bf16.mxu1 %v3520_v0 }
 0x304   :  { %2924 = vmatmul.mubr.msk.f32.vlgmr.msra.gmra.mrb[4].mxu1 %vm184_vm2, %v2712_v40 }
 0x305   :  { %3090 = vmatpush3.bf16.msra.mxu1 %v3692_v5  ;;  %2934 = vmatprep.mubr.msk.f32.mxu1 %vm3522_vm0, %v3521_v1 }
 0x306   :  { %3091 = vmatprep.subr.bf16.mxu1 %v3520_v0 }
 0x309   :  { %3093 = vmatpush3.bf16.msra.mxu1 %v3708_v9 }
 0x30a   :  { %2953 = vmatprep.subr.mxu1 %v3521_v1 }
 0x3d3   :  { %v375_v41 = vpop.f32.mrb[2].mxu1 }
 0x3d4   :  { %v2920_v42 = vpop.f32.mrb[3].mxu1 }
 0x3d7   :  { %v448_v43 = vpop.f32.mrb[4].mxu1 }
 0x3d8   :  { %v449_v44 = vadd.f32 %v448_v43, %v375_v41  ;;  %v2925_v45 = vpop.f32.mrb[5].mxu1 }
 0x3da   :  { %v452_v46 = vadd.f32 %v3739_v15, %v449_v44 }
 0x3dc   :  { %v2716_v47 = vmul.f32 -1.442695, %v452_v46 }
 0x3de   :  { %3427 = vpow2.f32 %v2716_v47 }
 0x3df   :  { %3429 = vtanh.f32 %v452_v46 }
 0x3e8   :  { %v3428_v48 = vpop.eup %3427 }
 0x3e9   :  { %v457_v49 = vadd.f32 1.0, %v3428_v48  ;;  %v3430_v50 = vpop.eup %3429 }
 0x3eb   :  { %3431 = vrcp.f32 %v457_v49 }
 0x3f5   :  { %v3432_v51 = vpop.eup %3431 }
 0x3f6   :  { %v460_v52 = vsel %vm3743_vm6, %v3430_v50, %v3432_v51  ;;  %v847_v51 = vsel %vm846_vm13, 1, %v3523_v11 }
 0x3f7   :  { %463 = vrot.lane.b32.xlu1 %v460_v52, %s3524_s28  ;;  %v461_v57 = vmul.f32 %v460_v52, %v301_v56 }
 0x3fb   :  { %481 = vperm.xlu1 %3413, %v479_v53  }
 0x469   :  { %v464_v54 = vpop.permute.xlu1 %463 }
 0x46a   :  { %v466_v55 = vmul.f32 %v464_v54, %v460_v52 }
 0x46c   :  { %468 = vrot.lane.b32.xlu0 %v466_v55, %s3525_s8 }
 0x47a   :  { %v482_v62 = vpop.permute.xlu1 %481 }
 0x47b   :  { %vm483_vm10 = vcmp.eq.s32.totalorder %v482_v62, 1 }
 0x4de   :  { %v469_v58 = vpop.permute.xlu0 %468 }
 0x4df   :  { %v471_v59 = vadd.f32 %v469_v58, %v461_v57  ;;  %v2727_v58 = vld [vmem:[%s4351_s10 + $0x20] sm:$0xff] }
 0x4e1   :  { %3433 = vtanh.f32 %v471_v59  ;;  %v485_v28 = vsel %vm483_vm10, %v471_v59, %v301_v56 }
 0x4eb   :  { %v3434_v61 = vpop.eup %3433 }
 0x4ec   :  { %474 = vrot.lane.b32.xlu0 %v3434_v61, %s3524_s28 }
 0x55e   :  { %v475_v63 = vpop.permute.xlu0 %474 }
 0x55f   :  { %v477_v2 = vmul.f32 %v475_v63, %v460_v52 }
 0x561   :  { %v484_v3 = vsel %vm483_vm10, %v477_v2, %v300_v38 }
 0x562   :  { %489 = vrot.lane.b32.xlu1 %v484_v3, %s3525_s8 }
 0x5d4   :  { %v490_v8 = vpop.permute.xlu1 %489 }
 0x5d5   :  { %2935 = vmatmul.mubr.msk.f32.vlgmr.msra.gmra.mrb[6].mxu1 %vm110_vm8, %v490_v8 }
 0x5d6   :  { %2954 = vmatpush3.msk.msra.mxu1 %vm188_vm1, %v3700_v7  ;;  %2955 = vmatprep.mubr.msk.f32.mxu1 %vm3522_vm0, %v3521_v1 }
 0x5d7   :  { %3100 = vmatprep.subr.bf16.mxu1 %v3520_v0 }
 0x5d9   :  { %2956 = vmatmul.mubr.msk.f32.vlgmr.msra.gmra.mrb[8].mxu1 %vm184_vm2, %v2722_v32 }
 0x5da   :  { %3102 = vmatpush3.bf16.msra.mxu1 %v3692_v5  ;;  %2966 = vmatprep.mubr.msk.f32.mxu1 %vm3522_vm0, %v3521_v1 }
 0x5db   :  { %3103 = vmatprep.subr.bf16.mxu1 %v3520_v0 }
 0x5de   :  { %3105 = vmatpush3.bf16.msra.mxu1 %v3708_v9 }
 0x5df   :  { %2985 = vmatprep.subr.mxu1 %v3521_v1 }
 0x6a8   :  { %v559_v12 = vpop.f32.mrb[6].mxu1 }
 0x6a9   :  { %v633_v13 = vadd.f32 %v632_v4, %v559_v12  ;;  %v2936_v14 = vpop.f32.mrb[7].mxu1 }
 0x6ab   :  { %v636_v16 = vadd.f32 %v3739_v15, %v633_v13 }
 0x6ac   :  { %v816_v38 = vpop.f32.mrb[8].mxu1 }
 0x6ad   :  { %v2721_v17 = vmul.f32 -1.442695, %v636_v16  ;;  %v2957_v39 = vpop.f32.mrb[9].mxu1 }
 0x6af   :  { %3435 = vpow2.f32 %v2721_v17 }
 0x6b0   :  { %3437 = vtanh.f32 %v636_v16 }
 0x6b9   :  { %v3436_v18 = vpop.eup %3435 }
 0x6ba   :  { %v641_v19 = vadd.f32 1.0, %v3436_v18  ;;  %v3438_v20 = vpop.eup %3437 }
 0x6bc   :  { %3439 = vrcp.f32 %v641_v19 }
 0x6c6   :  { %v3440_v21 = vpop.eup %3439 }
 0x6c7   :  { %v644_v23 = vsel %vm3743_vm6, %v3438_v20, %v3440_v21  ;;  %v1031_v21 = vsel %vm1030_vm15, 1, %v3523_v11 }
 0x6c8   :  { %647 = vrot.lane.b32.xlu0 %v644_v23, %s3524_s28  ;;  %v645_v29 = vmul.f32 %v644_v23, %v485_v28 }
 0x6cc   :  { %665 = vperm.xlu0 %3414, %v663_v24  }
 0x73a   :  { %v648_v26 = vpop.permute.xlu0 %647 }
 0x73b   :  { %v650_v27 = vmul.f32 %v648_v26, %v644_v23 }
 0x73d   :  { %652 = vrot.lane.b32.xlu1 %v650_v27, %s3525_s8 }
 0x74b   :  { %v666_v34 = vpop.permute.xlu0 %665 }
 0x74c   :  { %vm667_vm12 = vcmp.eq.s32.totalorder %v666_v34, 1 }
 0x7af   :  { %v653_v30 = vpop.permute.xlu1 %652 }
 0x7b0   :  { %v655_v31 = vadd.f32 %v653_v30, %v645_v29  ;;  %v2732_v30 = vld [vmem:[%s4351_s10 + $0x28] sm:$0xff] }
 0x7b2   :  { %3441 = vtanh.f32 %v655_v31  ;;  %v669_v54 = vsel %vm667_vm12, %v655_v31, %v485_v28 }
 0x7bc   :  { %v3442_v33 = vpop.eup %3441 }
 0x7bd   :  { %658 = vrot.lane.b32.xlu1 %v3442_v33, %s3524_s28 }
 0x82f   :  { %v659_v35 = vpop.permute.xlu1 %658 }
 0x830   :  { %v661_v36 = vmul.f32 %v659_v35, %v644_v23 }
 0x832   :  { %v668_v37 = vsel %vm667_vm12, %v661_v36, %v484_v3 }
 0x833   :  { %673 = vrot.lane.b32.xlu1 %v668_v37, %s3525_s8 }
 0x8a5   :  { %v674_v40 = vpop.permute.xlu1 %673 }
 0x8a6   :  { %2951 = vmatmul.mubr.msk.f32.vlgmr.msra.gmra.mrb[4].mxu0 %vm110_vm8, %v674_v40 }
 0x8a7   :  { %2970 = vmatpush3.msk.msra.mxu0 %vm188_vm1, %v3700_v7  ;;  %2971 = vmatprep.mubr.msk.f32.mxu0 %vm3522_vm0, %v3521_v1 }
 0x8a8   :  { %3106 = vmatprep.subr.bf16.mxu0 %v3520_v0 }
 0x8aa   :  { %2972 = vmatmul.mubr.msk.f32.vlgmr.msra.gmra.mrb[6].mxu0 %vm184_vm2, %v2727_v58 }
 0x8ab   :  { %3108 = vmatpush3.bf16.msra.mxu0 %v3692_v5  ;;  %2982 = vmatprep.mubr.msk.f32.mxu0 %vm3522_vm0, %v3521_v1 }
 0x8ac   :  { %3109 = vmatprep.subr.bf16.mxu0 %v3520_v0 }
 0x8af   :  { %3111 = vmatpush3.bf16.msra.mxu0 %v3708_v9 }
 0x8b0   :  { %3001 = vmatprep.subr.mxu0 %v3521_v1 }
 0x979   :  { %v743_v41 = vpop.f32.mrb[4].mxu0 }
 0x97a   :  { %v817_v42 = vadd.f32 %v816_v38, %v743_v41  ;;  %v2952_v43 = vpop.f32.mrb[5].mxu0 }
 0x97c   :  { %v820_v44 = vadd.f32 %v3739_v15, %v817_v42 }
 0x97d   :  { %v1000_v2 = vpop.f32.mrb[6].mxu0 }
 0x97e   :  { %v2726_v45 = vmul.f32 -1.442695, %v820_v44  ;;  %v2973_v3 = vpop.f32.mrb[7].mxu0 }
 0x980   :  { %3443 = vpow2.f32 %v2726_v45 }
 0x981   :  { %3445 = vtanh.f32 %v820_v44 }
 0x98a   :  { %v3444_v46 = vpop.eup %3443 }
 0x98b   :  { %v825_v47 = vadd.f32 1.0, %v3444_v46  ;;  %v3446_v48 = vpop.eup %3445 }
 0x98d   :  { %3447 = vrcp.f32 %v825_v47 }
 0x997   :  { %v3448_v49 = vpop.eup %3447 }
 0x998   :  { %v828_v50 = vsel %vm3743_vm6, %v3446_v48, %v3448_v49  ;;  %v1215_v49 = vsel %vm1214_vm4, 1, %v3523_v11 }
 0x999   :  { %831 = vrot.lane.b32.xlu0 %v828_v50, %s3524_s28  ;;  %v829_v55 = vmul.f32 %v828_v50, %v669_v54 }
 0x99d   :  { %849 = vperm.xlu0 %3414, %v847_v51  }
 0xa0b   :  { %v832_v52 = vpop.permute.xlu0 %831 }
 0xa0c   :  { %v834_v53 = vmul.f32 %v832_v52, %v828_v50 }
 0xa0e   :  { %836 = vrot.lane.b32.xlu1 %v834_v53, %s3525_s8 }
 0xa1c   :  { %v850_v60 = vpop.permute.xlu0 %849 }
 0xa1d   :  { %vm851_vm14 = vcmp.eq.s32.totalorder %v850_v60, 1 }
 0xa80   :  { %v837_v56 = vpop.permute.xlu1 %836 }
 0xa81   :  { %v839_v57 = vadd.f32 %v837_v56, %v829_v55  ;;  %v2737_v56 = vld [vmem:[%s4351_s10 + $0x30] sm:$0xff] }
 0xa83   :  { %3449 = vtanh.f32 %v839_v57  ;;  %v853_v26 = vsel %vm851_vm14, %v839_v57, %v669_v54 }
 0xa8d   :  { %v3450_v59 = vpop.eup %3449 }
 0xa8e   :  { %842 = vrot.lane.b32.xlu1 %v3450_v59, %s3524_s28 }
 0xb00   :  { %v843_v61 = vpop.permute.xlu1 %842 }
 0xb01   :  { %v845_v62 = vmul.f32 %v843_v61, %v828_v50 }
 0xb03   :  { %v852_v63 = vsel %vm851_vm14, %v845_v62, %v668_v37 }
 0xb04   :  { %857 = vrot.lane.b32.xlu0 %v852_v63, %s3525_s8 }
 0xb76   :  { %v858_v4 = vpop.permute.xlu0 %857 }
 0xb77   :  { %2967 = vmatmul.mubr.msk.f32.vlgmr.msra.gmra.mrb[10].mxu1 %vm110_vm8, %v858_v4 }
 0xb78   :  { %2986 = vmatpush3.msk.msra.mxu1 %vm188_vm1, %v3700_v7  ;;  %2987 = vmatprep.mubr.msk.f32.mxu1 %vm3522_vm0, %v3521_v1 }
 0xb79   :  { %3112 = vmatprep.subr.bf16.mxu1 %v3520_v0 }
 0xb7b   :  { %2988 = vmatmul.mubr.msk.f32.vlgmr.msra.gmra.mrb[12].mxu1 %vm184_vm2, %v2732_v30 }
 0xb7c   :  { %3114 = vmatpush3.bf16.msra.mxu1 %v3692_v5  ;;  %2998 = vmatprep.mubr.msk.f32.mxu1 %vm3522_vm0, %v3521_v1 }
 0xb7d   :  { %3115 = vmatprep.subr.bf16.mxu1 %v3520_v0 }
 0xb80   :  { %3117 = vmatpush3.bf16.msra.mxu1 %v3708_v9 }
 0xb81   :  { %3017 = vmatprep.subr.mxu1 %v3521_v1 }
 0xc4a   :  { %v927_v6 = vpop.f32.mrb[10].mxu1 }
 0xc4b   :  { %v1001_v8 = vadd.f32 %v1000_v2, %v927_v6  ;;  %v2968_v12 = vpop.f32.mrb[11].mxu1 }
 0xc4d   :  { %v1004_v13 = vadd.f32 %v3739_v15, %v1001_v8 }
 0xc4e   :  { %v1184_v36 = vpop.f32.mrb[12].mxu1 }
 0xc4f   :  { %v2731_v14 = vmul.f32 -1.442695, %v1004_v13  ;;  %v2989_v37 = vpop.f32.mrb[13].mxu1 }
 0xc51   :  { %3451 = vpow2.f32 %v2731_v14 }
 0xc52   :  { %3453 = vtanh.f32 %v1004_v13 }
 0xc5b   :  { %v3452_v16 = vpop.eup %3451 }
 0xc5c   :  { %v1009_v17 = vadd.f32 1.0, %v3452_v16  ;;  %v3454_v18 = vpop.eup %3453  ;;  %v1399_v16 = vsel %vm1398_vm7, 1, %v3523_v11 }
 0xc5e   :  { %3455 = vrcp.f32 %v1009_v17 }
 0xc68   :  { %v3456_v19 = vpop.eup %3455 }
 0xc69   :  { %v1012_v20 = vsel %vm3743_vm6, %v3454_v18, %v3456_v19 }
 0xc6a   :  { %1015 = vrot.lane.b32.xlu1 %v1012_v20, %s3524_s28  ;;  %v1013_v27 = vmul.f32 %v1012_v20, %v853_v26 }
 0xc6e   :  { %1033 = vperm.xlu1 %3413, %v1031_v21  }
 0xcdc   :  { %v1016_v23 = vpop.permute.xlu1 %1015 }
 0xcdd   :  { %v1018_v24 = vmul.f32 %v1016_v23, %v1012_v20 }
 0xcdf   :  { %1020 = vrot.lane.b32.xlu0 %v1018_v24, %s3525_s8  ;;  %v2742_v24 = vld [vmem:[%s4351_s10 + $0x38] sm:$0xff] }
 0xced   :  { %v1034_v32 = vpop.permute.xlu1 %1033 }
 0xcee   :  { %vm1035_vm3 = vcmp.eq.s32.totalorder %v1034_v32, 1 }
 0xd51   :  { %v1021_v28 = vpop.permute.xlu0 %1020 }
 0xd52   :  { %v1023_v29 = vadd.f32 %v1021_v28, %v1013_v27 }
 0xd54   :  { %3457 = vtanh.f32 %v1023_v29  ;;  %v1037_v52 = vsel %vm1035_vm3, %v1023_v29, %v853_v26 }
 0xd5e   :  { %v3458_v31 = vpop.eup %3457 }
 0xd5f   :  { %1026 = vrot.lane.b32.xlu0 %v3458_v31, %s3524_s28 }
 0xdd1   :  { %v1027_v33 = vpop.permute.xlu0 %1026 }
 0xdd2   :  { %v1029_v34 = vmul.f32 %v1027_v33, %v1012_v20 }
 0xdd4   :  { %v1036_v35 = vsel %vm1035_vm3, %v1029_v34, %v852_v63 }
 0xdd5   :  { %1041 = vrot.lane.b32.xlu1 %v1036_v35, %s3525_s8 }
 0xe47   :  { %v1042_v38 = vpop.permute.xlu1 %1041 }
 0xe48   :  { %2983 = vmatmul.mubr.msk.f32.vlgmr.msra.gmra.mrb[8].mxu0 %vm110_vm8, %v1042_v38 }
 0xe49   :  { %3002 = vmatpush3.msk.msra.mxu0 %vm188_vm1, %v3700_v7  ;;  %3003 = vmatprep.mubr.msk.f32.mxu0 %vm3522_vm0, %v3521_v1 }
 0xe4a   :  { %3118 = vmatprep.subr.bf16.mxu0 %v3520_v0 }
 0xe4c   :  { %3004 = vmatmul.mubr.msk.f32.vlgmr.msra.gmra.mrb[10].mxu0 %vm184_vm2, %v2737_v56 }
 0xe4d   :  { %3120 = vmatpush3.bf16.msra.mxu0 %v3692_v5  ;;  %3014 = vmatprep.mubr.msk.f32.mxu0 %vm3522_vm0, %v3521_v1 }
 0xe4e   :  { %3121 = vmatprep.subr.bf16.mxu0 %v3520_v0 }
 0xe51   :  { %3123 = vmatpush3.bf16.msra.mxu0 %v3708_v9 }
 0xf1b   :  { %v1111_v39 = vpop.f32.mrb[8].mxu0 }
 0xf1c   :  { %v1185_v40 = vadd.f32 %v1184_v36, %v1111_v39  ;;  %v2984_v41 = vpop.f32.mrb[9].mxu0 }
 0xf1e   :  { %v1188_v42 = vadd.f32 %v3739_v15, %v1185_v40 }
 0xf1f   :  { %v1368_v62 = vpop.f32.mrb[10].mxu0 }
 0xf20   :  { %v2736_v43 = vmul.f32 -1.442695, %v1188_v42  ;;  %v3005_v5 = vpop.f32.mrb[11].mxu0 }
 0xf22   :  { %3459 = vpow2.f32 %v2736_v43 }
 0xf23   :  { %3461 = vtanh.f32 %v1188_v42 }
 0xf2c   :  { %v3460_v44 = vpop.eup %3459 }
 0xf2d   :  { %v1193_v45 = vadd.f32 1.0, %v3460_v44  ;;  %v3462_v46 = vpop.eup %3461 }
 0xf2f   :  { %3463 = vrcp.f32 %v1193_v45 }
 0xf39   :  { %v3464_v47 = vpop.eup %3463 }
 0xf3a   :  { %v1196_v48 = vsel %vm3743_vm6, %v3462_v46, %v3464_v47 }
 0xf3b   :  { %1199 = vrot.lane.b32.xlu0 %v1196_v48, %s3524_s28  ;;  %v1197_v53 = vmul.f32 %v1196_v48, %v1037_v52 }
 0xf3f   :  { %1217 = vperm.xlu0 %3414, %v1215_v49  }
 0xfad   :  { %v1200_v50 = vpop.permute.xlu0 %1199 }
 0xfae   :  { %v1202_v51 = vmul.f32 %v1200_v50, %v1196_v48 }
 0xfb0   :  { %1204 = vrot.lane.b32.xlu1 %v1202_v51, %s3525_s8 }
 0xfbe   :  { %v1218_v58 = vpop.permute.xlu0 %1217 }
 0xfbf   :  { %vm1219_vm5 = vcmp.eq.s32.totalorder %v1218_v58, 1  ;;  %v3526_v58 = vmov 2  }
0x1022   :  { %v1205_v54 = vpop.permute.xlu1 %1204 }
0x1023   :  { %v1207_v55 = vadd.f32 %v1205_v54, %v1197_v53 }
0x1025   :  { %3465 = vtanh.f32 %v1207_v55  ;;  %v1221_v19 = vsel %vm1219_vm5, %v1207_v55, %v1037_v52 }
0x102f   :  { %v3466_v57 = vpop.eup %3465 }
0x1030   :  { %1210 = vrot.lane.b32.xlu1 %v3466_v57, %s3524_s28 }
0x10a2   :  { %v1211_v59 = vpop.permute.xlu1 %1210 }
0x10a3   :  { %v1213_v60 = vmul.f32 %v1211_v59, %v1196_v48  ;;  %v3527_v59 = vmov 1  }
0x10a5   :  { %v1220_v61 = vsel %vm1219_vm5, %v1213_v60, %v1036_v35 }
0x10a6   :  { %1225 = vrot.lane.b32.xlu0 %v1220_v61, %s3525_s8 }
0x1118   :  { %v1226_v63 = vpop.permute.xlu0 %1225 }
0x1119   :  { %2999 = vmatmul.mubr.msk.f32.vlgmr.msra.gmra.mrb[14].mxu1 %vm110_vm8, %v1226_v63  ;;  %v3528_v63 = vmov 3  }
0x111a   :  { %3018 = vmatpush3.msk.msra.mxu1 %vm188_vm1, %v3700_v7  ;;  %3019 = vmatprep.mubr.msk.f32.mxu1 %vm3522_vm0, %v3521_v1 }
0x111d   :  { %3020 = vmatmul.mubr.msk.f32.vlgmr.msra.gmra.mrb[16].mxu1 %vm184_vm2, %v2742_v24  ;;  %vm1582_vm2 = vcmp.gt.s32.totalorder %v3730_v10, 7  ;;  %v2748_v24 = vld [vmem:[%s4358_s6] ss:$0 sm:$0xff] }
0x111e   :  { %v1583_v44 = vsel %vm1582_vm2, 1, %v3523_v11  ;;  %v1631_v11 = vld [vmem:[%s4356_s0] sm:$0xff]  ;;  %s4360_s0 = sld [smem:[#allocation15_spill]] }
0x111f   :  { %v1632_v53 = vmul.f32 -0.105360515, %v1631_v11  ;;  %v1811_v11 = vld [vmem:[#allocation2 + $0x288] sm:$0xff] }
0x1121   :  { %v1633_v56 = vmul.f32 1.442695, %v1632_v53  ;;  %v1813_v53 = vld [vmem:[#allocation2 + $0x298] sm:$0xff] }
0x11ec   :  { %v1295_v9 = vpop.f32.mrb[14].mxu1 }
0x11ed   :  { %v1369_v2 = vadd.f32 %v1368_v62, %v1295_v9  ;;  %v3000_v3 = vpop.f32.mrb[15].mxu1  ;;  %v2747_v9 = vld [vmem:[%s4357_s30] ss:$0 sm:$0xff] }
0x11ee   :  { %v1797_v3 = vld [vmem:[#allocation2 + $0x218] sm:$0xff] }
0x11ef   :  { %v1372_v4 = vadd.f32 %v3739_v15, %v1369_v2  ;;  %v1795_v2 = vld [vmem:[#allocation2 + $0x208] sm:$0xff] }
0x11f0   :  { %v1552_v31 = vpop.f32.mrb[16].mxu1 }
0x11f1   :  { %v2741_v6 = vmul.f32 -1.442695, %v1372_v4  ;;  %v3021_v32 = vpop.f32.mrb[17].mxu1 }
0x11f2   :  { %v1736_v32 = vld [vmem:[#allocation2 + $0x30] sm:$0xff] }
0x11f3   :  { %3467 = vpow2.f32 %v2741_v6  ;;  %v3188_v6 = vpack.c.bf16 %v1797_v3, %v1795_v2  ;;  %v1748_v2 = vld [vmem:[#allocation2 + $0x90] sm:$0xff]  ;;  %v1815_v3 = vld [vmem:[#allocation2 + $0x2a8] sm:$0xff] }
0x11f4   :  { %3469 = vtanh.f32 %v1372_v4  ;;  %v1731_v4 = vld [vmem:[#allocation2 + $0x8] sm:$0xff] }
0x11f5   :  { %3189 = vmatprep.subr.bf16.mxu1 %v3188_v6  ;;  %v1751_v6 = vld [vmem:[#allocation2 + $0xa8] sm:$0xff] }
0x11fd   :  { %v3468_v8 = vpop.eup %3467 }
0x11fe   :  { %v1377_v12 = vadd.f32 1.0, %v3468_v8  ;;  %v3470_v13 = vpop.eup %3469  ;;  %v1733_v8 = vld [vmem:[#allocation2 + $0x18] sm:$0xff] }
0x1200   :  { %3471 = vrcp.f32 %v1377_v12  ;;  %v1794_v12 = vld [vmem:[#allocation2 + $0x200] sm:$0xff] }
0x120a   :  { %v3472_v14 = vpop.eup %3471 }
0x120b   :  { %v1380_v7 = vsel %vm3743_vm6, %v3470_v13, %v3472_v14  ;;  %v1796_v13 = vld [vmem:[#allocation2 + $0x210] sm:$0xff]  ;;  %v3124_v14 = vpack.c.bf16 %v1733_v8, %v1731_v4  ;;  %v1817_v4 = vld [vmem:[#allocation2 + $0x2b8] sm:$0xff] }
0x120c   :  { %1383 = vrot.lane.b32.xlu1 %v1380_v7, %s3524_s28  ;;  %v1381_v20 = vmul.f32 %v1380_v7, %v1221_v19  ;;  %v1753_v8 = vld [vmem:[#allocation2 + $0xb8] sm:$0xff] }
0x120d   :  { %3125 = vmatprep.subr.bf16.mxu0 %v3124_v14  ;;  %v3208_v14 = vpack.c.bf16 %v1817_v4, %v1815_v3  ;;  %v1768_v4 = vld [vmem:[#allocation2 + $0x130] sm:$0xff] }
0x1210   :  { %1401 = vperm.xlu1 %3413, %v1399_v16   ;;  %v1730_v16 = vld [vmem:[#allocation2] sm:$0xff] }
0x127e   :  { %v1384_v17 = vpop.permute.xlu1 %1383 }
0x127f   :  { %v1386_v18 = vmul.f32 %v1384_v17, %v1380_v7  ;;  %v1732_v17 = vld [vmem:[#allocation2 + $0x10] sm:$0xff] }
0x1281   :  { %1388 = vrot.lane.b32.xlu0 %v1386_v18, %s3525_s8  ;;  %v1799_v18 = vld [vmem:[#allocation2 + $0x228] sm:$0xff] }
0x128f   :  { %v1402_v27 = vpop.permute.xlu1 %1401 }
0x1290   :  { %vm1403_vm1 = vcmp.eq.s32.totalorder %v1402_v27, 1 }
0x12f3   :  { %v1389_v21 = vpop.permute.xlu0 %1388 }
0x12f4   :  { %v1391_v23 = vadd.f32 %v1389_v21, %v1381_v20  ;;  %v1801_v20 = vld [vmem:[#allocation2 + $0x238] sm:$0xff]  ;;  %v1735_v21 = vld [vmem:[#allocation2 + $0x28] sm:$0xff] }
0x12f6   :  { %3473 = vtanh.f32 %v1391_v23  ;;  %v1405_v46 = vsel %vm1403_vm1, %v1391_v23, %v1221_v19  ;;  %v3126_v19 = vpack.c.bf16 %v1732_v17, %v1730_v16  ;;  %v1737_v23 = vld [vmem:[#allocation2 + $0x38] sm:$0xff]  ;;  %v1816_v16 = vld [vmem:[#allocation2 + $0x2b0] sm:$0xff]  ;;  %v1750_v17 = vld [vmem:[#allocation2 + $0xa0] sm:$0xff] }
0x12f7   :  { %v3128_v27 = vpack.c.bf16 %v1737_v23, %v1735_v21  ;;  %v1821_v21 = vld [vmem:[#allocation2 + $0x2d8] sm:$0xff]  ;;  %v1755_v23 = vld [vmem:[#allocation2 + $0xc8] sm:$0xff] }
0x1300   :  { %v3474_v26 = vpop.eup %3473 }
0x1301   :  { %1394 = vrot.lane.b32.xlu0 %v3474_v26, %s3524_s28  ;;  %v3192_v26 = vpack.c.bf16 %v1801_v20, %v1799_v18  ;;  %v3144_v18 = vpack.c.bf16 %v1753_v8, %v1751_v6  ;;  %v1819_v20 = vld [vmem:[#allocation2 + $0x2c8] sm:$0xff]  ;;  %v1837_v8 = vld [vmem:[#allocation2 + $0x358] sm:$0xff] }
0x1302   :  { %v1835_v6 = vld [vmem:[#allocation2 + $0x348] sm:$0xff] }
0x1373   :  { %v1395_v28 = vpop.permute.xlu0 %1394 }
0x1374   :  { %v1397_v29 = vmul.f32 %v1395_v28, %v1380_v7  ;;  %v3190_v7 = vpack.c.bf16 %v1796_v13, %v1794_v12  ;;  %v1798_v28 = vld [vmem:[#allocation2 + $0x220] sm:$0xff] }
0x1376   :  { %v1404_v30 = vsel %vm1403_vm1, %v1397_v29, %v1220_v61  ;;  %3191 = vmatpush1.bf16.msra.mxu1 %v3190_v7  ;;  %v1800_v29 = vld [vmem:[#allocation2 + $0x230] sm:$0xff]  ;;  %v1814_v7 = vld [vmem:[#allocation2 + $0x2a0] sm:$0xff] }
0x1377   :  { %1409 = vrot.lane.b32.xlu1 %v1404_v30, %s3525_s8  ;;  %3193 = vmatprep.subr.bf16.mxu1 %v3192_v26  ;;  %v3210_v26 = vpack.c.bf16 %v1816_v16, %v1814_v7  ;;  %v3228_v16 = vpack.c.bf16 %v1837_v8, %v1835_v6  ;;  %v1852_v8 = vld [vmem:[#allocation2 + $0x3d0] sm:$0xff] }
0x13e9   :  { %v1410_v33 = vpop.permute.xlu1 %1409 }
0x13ea   :  { %3015 = vmatmul.mubr.msk.f32.vlgmr.msra.gmra.mrb[12].mxu0 %vm110_vm8, %v1410_v33  ;;  %v1803_v33 = vld [vmem:[#allocation2 + $0x248] sm:$0xff] }
0x13eb   :  { %3127 = vmatpush1.bf16.msra.mxu0 %v3126_v19  ;;  %v1752_v19 = vld [vmem:[#allocation2 + $0xb0] sm:$0xff] }
0x13ec   :  { %3129 = vmatprep.subr.bf16.mxu0 %v3128_v27  ;;  %v3146_v27 = vpack.c.bf16 %v1752_v19, %v1750_v17  ;;  %v1834_v17 = vld [vmem:[#allocation2 + $0x340] sm:$0xff] }
0x13ed   :  { %v1770_v19 = vld [vmem:[#allocation2 + $0x140] sm:$0xff] }
0x14bd   :  { %v1479_v34 = vpop.f32.mrb[12].mxu0 }
0x14be   :  { %v1553_v35 = vadd.f32 %v1552_v31, %v1479_v34  ;;  %v3016_v36 = vpop.f32.mrb[13].mxu0  ;;  %v3194_v31 = vpack.c.bf16 %v1800_v29, %v1798_v28  ;;  %v1805_v34 = vld [vmem:[#allocation2 + $0x258] sm:$0xff]  ;;  %v3212_v28 = vpack.c.bf16 %v1821_v21, %v1819_v20  ;;  %v1818_v29 = vld [vmem:[#allocation2 + $0x2c0] sm:$0xff]  ;;  %v1772_v21 = vld [vmem:[#allocation2 + $0x150] sm:$0xff] }
0x14bf   :  { %v3196_v36 = vpack.c.bf16 %v1805_v34, %v1803_v33  ;;  %v1756_v33 = vld [vmem:[#allocation2 + $0xd0] sm:$0xff]  ;;  %v1823_v34 = vld [vmem:[#allocation2 + $0x2e8] sm:$0xff] }
0x14c0   :  { %v1556_v37 = vadd.f32 %v3739_v15, %v1553_v35  ;;  %3195 = vmatpush1.bf16.msra.mxu1 %v3194_v31  ;;  %v1754_v31 = vld [vmem:[#allocation2 + $0xc0] sm:$0xff] }
0x14c1   :  { %3197 = vmatprep.subr.bf16.mxu1 %v3196_v36  ;;  %v1759_v36 = vld [vmem:[#allocation2 + $0xe8] sm:$0xff] }
0x14c2   :  { %v2746_v38 = vmul.f32 -1.442695, %v1556_v37 }
0x14c4   :  { %3475 = vpow2.f32 %v2746_v38  ;;  %v1741_v38 = vld [vmem:[#allocation2 + $0x58] sm:$0xff] }
0x14c5   :  { %3477 = vtanh.f32 %v1556_v37  ;;  %v1739_v37 = vld [vmem:[#allocation2 + $0x48] sm:$0xff] }
0x14ce   :  { %v3476_v39 = vpop.eup %3475 }
0x14cf   :  { %v1561_v40 = vadd.f32 1.0, %v3476_v39  ;;  %v3478_v41 = vpop.eup %3477  ;;  %v1802_v39 = vld [vmem:[#allocation2 + $0x240] sm:$0xff] }
0x14d1   :  { %3479 = vrcp.f32 %v1561_v40  ;;  %v3132_v40 = vpack.c.bf16 %v1741_v38, %v1739_v37  ;;  %v1761_v37 = vld [vmem:[#allocation2 + $0xf8] sm:$0xff] }
0x14db   :  { %v3480_v42 = vpop.eup %3479 }
0x14dc   :  { %v1564_v43 = vsel %vm3743_vm6, %v3478_v41, %v3480_v42  ;;  %v1804_v41 = vld [vmem:[#allocation2 + $0x250] sm:$0xff]  ;;  %v1738_v42 = vld [vmem:[#allocation2 + $0x40] sm:$0xff] }
0x14dd   :  { %1567 = vrot.lane.b32.xlu0 %v1564_v43, %s3524_s28  ;;  %v1565_v47 = vmul.f32 %v1564_v43, %v1405_v46  ;;  %v1743_v46 = vld [vmem:[#allocation2 + $0x68] sm:$0xff] }
0x14e1   :  { %1585 = vperm.xlu0 %3414, %v1583_v44   ;;  %v3198_v44 = vpack.c.bf16 %v1804_v41, %v1802_v39  ;;  %v3150_v39 = vpack.c.bf16 %v1756_v33, %v1754_v31  ;;  %v1822_v41 = vld [vmem:[#allocation2 + $0x2e0] sm:$0xff] }
0x14e2   :  { %v1838_v31 = vld [vmem:[#allocation2 + $0x360] sm:$0xff] }
0x14e3   :  { %3199 = vmatpush1.bf16.msra.mxu1 %v3198_v44  ;;  %v3152_v44 = vpack.c.bf16 %v1761_v37, %v1759_v36 }
0x14e5   :  { %3415 = vset.pattern.permute.xlu0 %v3527_v59  ;;  %v3204_v59 = vpack.c.bf16 %v1813_v53, %v1811_v11  ;;  %v1764_v53 = vld [vmem:[#allocation2 + $0x110] sm:$0xff] }
0x154f   :  { %v1568_v45 = vpop.permute.xlu0 %1567 }
0x1550   :  { %v1570_v15 = vmul.f32 %v1568_v45, %v1564_v43  ;;  %v1807_v45 = vld [vmem:[#allocation2 + $0x268] sm:$0xff] }
0x1552   :  { %1572 = vrot.lane.b32.xlu1 %v1570_v15, %s3525_s8  ;;  %v1809_v15 = vld [vmem:[#allocation2 + $0x278] sm:$0xff] }
0x1560   :  { %v1586_v10 = vpop.permute.xlu0 %1585 }
0x1561   :  { %vm1587_vm6 = vcmp.eq.s32.totalorder %v1586_v10, 1  ;;  %v1808_v10 = vld [vmem:[#allocation2 + $0x270] sm:$0xff] }
0x15c4   :  { %v1573_v48 = vpop.permute.xlu1 %1572 }
0x15c5   :  { %v1575_v49 = vadd.f32 %v1573_v48, %v1565_v47  ;;  %v3200_v48 = vpack.c.bf16 %v1809_v15, %v1807_v45  ;;  %v1760_v45 = vld [vmem:[#allocation2 + $0xf0] sm:$0xff]  ;;  %v1827_v15 = vld [vmem:[#allocation2 + $0x308] sm:$0xff] }
0x15c7   :  { %3481 = vtanh.f32 %v1575_v49  ;;  %v1745_v49 = vld [vmem:[#allocation2 + $0x78] sm:$0xff]  ;;  %3201 = vmatprep.subr.bf16.mxu1 %v3200_v48 }
0x15c8   :  { %3483 = vpow2.f32 %v1633_v56  ;;  %v1765_v48 = vld [vmem:[#allocation2 + $0x118] sm:$0xff] }
0x15d1   :  { %v3482_v50 = vpop.eup %3481 }
0x15d2   :  { %1578 = vrot.lane.b32.xlu1 %v3482_v50, %s3524_s28  ;;  %v3933_v57 = vpop.eup %3483  ;;  %v1806_v50 = vld [vmem:[#allocation2 + $0x260] sm:$0xff] }
0x15d3   :  { %v3202_v56 = vpack.c.bf16 %v1808_v10, %v1806_v50 }
0x15d5   :  { %3203 = vmatpush1.bf16.msra.mxu1 %v3202_v56  ;;  %v1767_v56 = vld [vmem:[#allocation2 + $0x128] sm:$0xff] }
0x15d6   :  { %3205 = vmatprep.subr.bf16.mxu1 %v3204_v59 }
0x1644   :  { %v1579_v25 = vpop.permute.xlu1 %1578 }
0x1645   :  { %v1581_v51 = vmul.f32 %v1579_v25, %v1564_v43  ;;  %v1740_v43 = vld [vmem:[#allocation2 + $0x50] sm:$0xff]  ;;  %v3136_v25 = vpack.c.bf16 %v1745_v49, %v1743_v46  ;;  %v1829_v46 = vld [vmem:[#allocation2 + $0x318] sm:$0xff] }
0x1646   :  { %v3134_v47 = vpack.c.bf16 %v1740_v43, %v1738_v42  ;;  %v1824_v42 = vld [vmem:[#allocation2 + $0x2f0] sm:$0xff]  ;;  %v1758_v43 = vld [vmem:[#allocation2 + $0xe0] sm:$0xff]  ;;  %v3220_v10 = vpack.c.bf16 %v1829_v46, %v1827_v15 }
0x1647   :  { %v1588_v52 = vsel %vm1587_vm6, %v1581_v51, %v1404_v30  ;;  %v1734_v30 = vld [vmem:[#allocation2 + $0x20] sm:$0xff]  ;;  %v3218_v49 = vpack.c.bf16 %v1824_v42, %v1822_v41  ;;  %v3154_v50 = vpack.c.bf16 %v1760_v45, %v1758_v43  ;;  %v1845_v41 = vld [vmem:[#allocation2 + $0x398] sm:$0xff]  ;;  %v1779_v43 = vld [vmem:[#allocation2 + $0x188] sm:$0xff] }
0x1648   :  { %1592 = vrot.lane.b32.xlu0 %v1588_v52, %s3525_s8  ;;  %v3130_v35 = vpack.c.bf16 %v1736_v32, %v1734_v30  ;;  %v1742_v51 = vld [vmem:[#allocation2 + $0x60] sm:$0xff]  ;;  %v1820_v30 = vld [vmem:[#allocation2 + $0x2d0] sm:$0xff] }
0x1649   :  { %v3214_v38 = vpack.c.bf16 %v1820_v30, %v1818_v29  ;;  %v3166_v29 = vpack.c.bf16 %v1772_v21, %v1770_v19  ;;  %v1842_v45 = vld [vmem:[#allocation2 + $0x380] sm:$0xff]  ;;  %v1844_v46 = vld [vmem:[#allocation2 + $0x390] sm:$0xff] }
0x164a   :  { %3131 = vmatpush1.bf16.msra.mxu0 %v3130_v35  ;;  %v1825_v35 = vld [vmem:[#allocation2 + $0x2f8] sm:$0xff]  ;;  %v1854_v21 = vld [vmem:[#allocation2 + $0x3e0] sm:$0xff] }
0x164b   :  { %3133 = vmatprep.subr.bf16.mxu0 %v3132_v40  ;;  %v3216_v40 = vpack.c.bf16 %v1825_v35, %v1823_v34  ;;  %v1774_v34 = vld [vmem:[#allocation2 + $0x160] sm:$0xff]  ;;  %v1776_v35 = vld [vmem:[#allocation2 + $0x170] sm:$0xff] }
0x164c   :  { %v3170_v37 = vpack.c.bf16 %v1776_v35, %v1774_v34  ;;  %v1635_v35 = vld [vmem:[%s4359_s11] sm:$0xff] }
0x164e   :  { %3135 = vmatpush1.bf16.msra.mxu0 %v3134_v47  ;;  %v1763_v47 = vld [vmem:[#allocation2 + $0x108] sm:$0xff] }
0x164f   :  { %3137 = vmatprep.subr.bf16.mxu0 %v3136_v25  ;;  %v1826_v25 = vld [vmem:[#allocation2 + $0x300] sm:$0xff]  ;;  %v3156_v11 = vpack.c.bf16 %v1765_v48, %v1763_v47  ;;  %v1780_v48 = vld [vmem:[#allocation2 + $0x190] sm:$0xff] }
0x1650   :  { %v1778_v47 = vld [vmem:[#allocation2 + $0x180] sm:$0xff] }
0x16ba   :  { %v1593_v54 = vpop.permute.xlu0 %1592 }
0x16bb   :  { %v1595_v55 = vsel %vm110_vm8, %v1593_v54, 0.0  ;;  %v1747_v54 = vld [vmem:[#allocation2 + $0x88] sm:$0xff] }
0x16bc   :  { %1596 = vadd.xlane.f32.xlu1 %v1595_v55  ;;  %v1749_v55 = vld [vmem:[#allocation2 + $0x98] sm:$0xff] }
0x16cd   :  { %1643 = vperm.xlu1 %3413, %v3933_v57  }
0x16d1   :  { %3416 = vset.pattern.permute.xlu1 %v3526_v58 }
0x16d2   :  { %1683 = vperm.xlu1 %3416, %v3933_v57  }
0x16d6   :  { %3417 = vset.pattern.permute.xlu1 %v3528_v63 }
0x16d7   :  { %1706 = vperm.xlu1 %3417, %v3933_v57  }
0x16db   :  { %1618 = vrot.lane.b32.xlu1 %v2747_v9, %s3529_s1  ;;  %v3140_v9 = vpack.c.bf16 %v1749_v55, %v1747_v54  ;;  %v1831_v54 = vld [vmem:[#allocation2 + $0x328] sm:$0xff]  ;;  %v1833_v55 = vld [vmem:[#allocation2 + $0x338] sm:$0xff] }
0x16df   :  { %1627 = vrot.lane.b32.xlu1 %v2748_v24, %s3529_s1  ;;  %v1757_v24 = vld [vmem:[#allocation2 + $0xd8] sm:$0xff] }
0x16e0   :  { %v3148_v32 = vpack.c.bf16 %v1757_v24, %v1755_v23  ;;  %v1839_v23 = vld [vmem:[#allocation2 + $0x368] sm:$0xff]  ;;  %v1841_v24 = vld [vmem:[#allocation2 + $0x378] sm:$0xff] }
0x16e1   :  { %v3232_v30 = vpack.c.bf16 %v1841_v24, %v1839_v23  ;;  %v1856_v23 = vld [vmem:[#allocation2 + $0x3f0] sm:$0xff] }
0x1749   :  { %v1597_v60 = vpop.xlane.xlu1 %1596 }
0x174a   :  { %v1599_v61 = vmul.f32 0.03125, %v1597_v60  ;;  %v1810_v60 = vld [vmem:[#allocation2 + $0x280] sm:$0xff] }
0x174c   :  { %v3937_v62 = vsub.f32 %v1588_v52, %v1599_v61  ;;  %v1744_v52 = vld [vmem:[#allocation2 + $0x70] sm:$0xff] }
0x174d   :  { %v3138_v58 = vpack.c.bf16 %v1744_v52, %v1742_v51  ;;  %v1812_v61 = vld [vmem:[#allocation2 + $0x290] sm:$0xff]  ;;  %v1762_v52 = vld [vmem:[#allocation2 + $0x100] sm:$0xff] }
0x174e   :  { %v1601_v5 = vmul.f32 %v3937_v62, %v3937_v62  ;;  %v3206_v12 = vpack.c.bf16 %v1812_v61, %v1810_v60  ;;  %v1828_v51 = vld [vmem:[#allocation2 + $0x310] sm:$0xff]  ;;  %v3158_v60 = vpack.c.bf16 %v1764_v53, %v1762_v52  ;;  %v3224_v61 = vpack.c.bf16 %v1833_v55, %v1831_v54  ;;  %v1783_v52 = vld [vmem:[#allocation2 + $0x1a8] sm:$0xff]  ;;  %v1846_v53 = vld [vmem:[#allocation2 + $0x3a0] sm:$0xff] }
0x174f   :  { %3139 = vmatpush1.bf16.msra.mxu0 %v3138_v58  ;;  %v1769_v58 = vld [vmem:[#allocation2 + $0x138] sm:$0xff]  ;;  %v3222_v59 = vpack.c.bf16 %v1828_v51, %v1826_v25  ;;  %v1848_v55 = vld [vmem:[#allocation2 + $0x3b0] sm:$0xff] }
0x1750   :  { %1603 = vrot.lane.b32.xlu0 %v1601_v5, %s3525_s8  ;;  %v1746_v5 = vld [vmem:[#allocation2 + $0x80] sm:$0xff]  ;;  %3141 = vmatprep.subr.bf16.mxu0 %v3140_v9  ;;  %v1832_v9 = vld [vmem:[#allocation2 + $0x330] sm:$0xff]  ;;  %v3160_v3 = vpack.c.bf16 %v1769_v58, %v1767_v56  ;;  %v1849_v25 = vld [vmem:[#allocation2 + $0x3b8] sm:$0xff] }
0x1751   :  { %v3142_v13 = vpack.c.bf16 %v1748_v2, %v1746_v5  ;;  %3207 = vmatpush1.bf16.msra.mxu1 %v3206_v12  ;;  %v1830_v5 = vld [vmem:[#allocation2 + $0x320] sm:$0xff]  ;;  %v1771_v12 = vld [vmem:[#allocation2 + $0x148] sm:$0xff]  ;;  %v1784_v58 = vld [vmem:[#allocation2 + $0x1b0] sm:$0xff] }
0x1752   :  { %3209 = vmatprep.subr.bf16.mxu1 %v3208_v14  ;;  %v1766_v2 = vld [vmem:[#allocation2 + $0x120] sm:$0xff]  ;;  %v3226_v14 = vpack.c.bf16 %v1832_v9, %v1830_v5  ;;  %v1853_v5 = vld [vmem:[#allocation2 + $0x3d8] sm:$0xff] }
0x1753   :  { %3143 = vmatpush1.bf16.msra.mxu0 %v3142_v13  ;;  %v1773_v13 = vld [vmem:[#allocation2 + $0x158] sm:$0xff]  ;;  %v3162_v7 = vpack.c.bf16 %v1768_v4, %v1766_v2  ;;  %v1782_v56 = vld [vmem:[#allocation2 + $0x1a0] sm:$0xff]  ;;  %v1787_v2 = vld [vmem:[#allocation2 + $0x1c8] sm:$0xff] }
0x1754   :  { %3145 = vmatprep.subr.bf16.mxu0 %v3144_v18  ;;  %v1836_v18 = vld [vmem:[#allocation2 + $0x350] sm:$0xff]  ;;  %v3164_v20 = vpack.c.bf16 %v1773_v13, %v1771_v12  ;;  %v1850_v4 = vld [vmem:[#allocation2 + $0x3c0] sm:$0xff] }
0x1755   :  { %3211 = vmatpush1.bf16.msra.mxu1 %v3210_v26  ;;  %v1775_v26 = vld [vmem:[#allocation2 + $0x168] sm:$0xff]  ;;  %v1786_v12 = vld [vmem:[#allocation2 + $0x1c0] sm:$0xff]  ;;  %v1788_v13 = vld [vmem:[#allocation2 + $0x1d0] sm:$0xff] }
0x1756   :  { %3213 = vmatprep.subr.bf16.mxu1 %v3212_v28  ;;  %v3230_v28 = vpack.c.bf16 %v1836_v18, %v1834_v17  ;;  %v1857_v17 = vld [vmem:[#allocation2 + $0x3f8] sm:$0xff]  ;;  %v1791_v18 = vld [vmem:[#allocation2 + $0x1e8] sm:$0xff] }
0x1757   :  { %3147 = vmatpush1.bf16.msra.mxu0 %v3146_v27  ;;  %v1777_v27 = vld [vmem:[#allocation2 + $0x178] sm:$0xff] }
0x1758   :  { %3149 = vmatprep.subr.bf16.mxu0 %v3148_v32  ;;  %v1840_v32 = vld [vmem:[#allocation2 + $0x370] sm:$0xff]  ;;  %v3168_v33 = vpack.c.bf16 %v1777_v27, %v1775_v26  ;;  %v3250_v26 = vpack.c.bf16 %v1856_v23, %v1854_v21  ;;  %v1790_v27 = vld [vmem:[#allocation2 + $0x1e0] sm:$0xff] }
0x1759   :  { %3215 = vmatpush1.bf16.msra.mxu1 %v3214_v38  ;;  %v3234_v36 = vpack.c.bf16 %v1840_v32, %v1838_v31  ;;  %v1644_v32 = vpop.permute.xlu1 %1643 }
0x175a   :  { %3217 = vmatprep.subr.bf16.mxu1 %v3216_v40  ;;  %v1843_v40 = vld [vmem:[#allocation2 + $0x388] sm:$0xff] }
0x175b   :  { %3151 = vmatpush1.bf16.msra.mxu0 %v3150_v39  ;;  %v3236_v42 = vpack.c.bf16 %v1845_v41, %v1843_v40  ;;  %v2756_v40 = vld [vmem:[%s4359_s11 + $0x68] sm:$0xff]  ;;  %v1638_v41 = vld [vmem:[%s4359_s11 + $0x18] sm:$0xff] }
0x175c   :  { %3153 = vmatprep.subr.bf16.mxu0 %v3152_v44  ;;  %v1781_v44 = vld [vmem:[#allocation2 + $0x198] sm:$0xff] }
0x175d   :  { %3219 = vmatpush1.bf16.msra.mxu1 %v3218_v49  ;;  %v3172_v15 = vpack.c.bf16 %v1781_v44, %v1779_v43  ;;  %v3238_v49 = vpack.c.bf16 %v1844_v46, %v1842_v45  ;;  %v2749_v43 = vld [vmem:[%s4359_s11 + $0x30] sm:$0xff]  ;;  %v2751_v44 = vld [vmem:[%s4359_s11 + $0x40] sm:$0xff]  ;;  %v2758_v46 = vld [vmem:[%s4359_s11 + $0x78] sm:$0xff] }
0x175e   :  { %3221 = vmatprep.subr.bf16.mxu1 %v3220_v10  ;;  %v1847_v10 = vld [vmem:[#allocation2 + $0x3a8] sm:$0xff] }
0x175f   :  { %3155 = vmatpush1.bf16.msra.mxu0 %v3154_v50  ;;  %v3174_v50 = vpack.c.bf16 %v1780_v48, %v1778_v47  ;;  %v3240_v51 = vpack.c.bf16 %v1849_v25, %v1847_v10  ;;  %v2755_v47 = vld [vmem:[%s4359_s11 + $0x60] sm:$0xff]  ;;  %v1646_v48 = vmul.f32 %v1644_v32, %v1635_v35 }
0x1760   :  { %3157 = vmatprep.subr.bf16.mxu0 %v3156_v11  ;;  %v1785_v11 = vld [vmem:[#allocation2 + $0x1b8] sm:$0xff]  ;;  %v2763_v10 = vld [vmem:[%s4359_s11 + $0xa0] sm:$0xff] }
0x1761   :  { %3223 = vmatpush1.bf16.msra.mxu1 %v3222_v59  ;;  %v3176_v54 = vpack.c.bf16 %v1785_v11, %v1783_v52  ;;  %v3242_v59 = vpack.c.bf16 %v1848_v55, %v1846_v53  ;;  %v2753_v52 = vld [vmem:[%s4359_s11 + $0x50] sm:$0xff]  ;;  %v2750_v53 = vld [vmem:[%s4359_s11 + $0x38] sm:$0xff]  ;;  %v2752_v55 = vld [vmem:[%s4359_s11 + $0x48] sm:$0xff] }
0x1762   :  { %3225 = vmatprep.subr.bf16.mxu1 %v3224_v61  ;;  %v1851_v61 = vld [vmem:[#allocation2 + $0x3c8] sm:$0xff] }
0x1763   :  { %3159 = vmatpush1.bf16.msra.mxu0 %v3158_v60  ;;  %v3178_v60 = vpack.c.bf16 %v1784_v58, %v1782_v56  ;;  %v3244_v9 = vpack.c.bf16 %v1853_v5, %v1851_v61  ;;  %v2754_v61 = vld [vmem:[%s4359_s11 + $0x58] sm:$0xff]  ;;  %v2759_v5 = vld [vmem:[%s4359_s11 + $0x80] sm:$0xff] }
0x1764   :  { %3161 = vmatprep.subr.bf16.mxu0 %v3160_v3  ;;  %v1789_v3 = vld [vmem:[#allocation2 + $0x1d8] sm:$0xff] }
0x1765   :  { %3227 = vmatpush1.bf16.msra.mxu1 %v3226_v14  ;;  %v3180_v6 = vpack.c.bf16 %v1789_v3, %v1787_v2  ;;  %v3246_v14 = vpack.c.bf16 %v1852_v8, %v1850_v4 }
0x1766   :  { %3229 = vmatprep.subr.bf16.mxu1 %v3228_v16  ;;  %v1855_v16 = vld [vmem:[#allocation2 + $0x3e8] sm:$0xff] }
0x1767   :  { %3163 = vmatpush1.bf16.msra.mxu0 %v3162_v7  ;;  %v3182_v7 = vpack.c.bf16 %v1788_v13, %v1786_v12  ;;  %v3248_v19 = vpack.c.bf16 %v1857_v17, %v1855_v16  ;;  %v2764_v16 = vld [vmem:[%s4359_s11 + $0xa8] sm:$0xff] }
0x1768   :  { %3165 = vmatprep.subr.bf16.mxu0 %v3164_v20  ;;  %v1793_v20 = vld [vmem:[#allocation2 + $0x1f8] sm:$0xff]  ;;  %v2760_v17 = vld [vmem:[%s4359_s11 + $0x88] sm:$0xff] }
0x1769   :  { %3231 = vmatpush1.bf16.msra.mxu1 %v3230_v28  ;;  %v3184_v24 = vpack.c.bf16 %v1793_v20, %v1791_v18  ;;  %v1792_v28 = vld [vmem:[#allocation2 + $0x1f0] sm:$0xff] }
0x176a   :  { %3233 = vmatprep.subr.bf16.mxu1 %v3232_v30  ;;  %v1861_v30 = vld [vmem:[#allocation2 + $0x418] sm:$0xff] }
0x176b   :  { %3167 = vmatpush1.bf16.msra.mxu0 %v3166_v29  ;;  %v3186_v29 = vpack.c.bf16 %v1792_v28, %v1790_v27  ;;  %v2766_v28 = vld [vmem:[%s4359_s11 + $0xb8] sm:$0xff] }
0x176c   :  { %3169 = vmatprep.subr.bf16.mxu0 %v3168_v33  ;;  %v1684_v33 = vpop.permute.xlu1 %1683 }
0x176d   :  { %3235 = vmatpush1.bf16.msra.mxu1 %v3234_v36  ;;  %v1687_v56 = vmul.f32 %v2756_v40, %v1684_v33  ;;  %v1686_v3 = vmul.f32 %v2755_v47, %v1684_v33  ;;  %v1690_v20 = vmul.f32 %v2759_v5, %v1684_v33 }
0x176e   :  { %3237 = vmatprep.subr.bf16.mxu1 %v3236_v42  ;;  %v1640_v42 = vld [vmem:[%s4359_s11 + $0x28] sm:$0xff] }
0x176f   :  { %3171 = vmatpush1.bf16.msra.mxu0 %v3170_v37  ;;  %v1637_v37 = vld [vmem:[%s4359_s11 + $0x10] sm:$0xff] }
0x1770   :  { %3173 = vmatprep.subr.bf16.mxu0 %v3172_v15  ;;  %v1707_v45 = vpop.permute.xlu1 %1706  ;;  %v2762_v15 = vld [vmem:[%s4359_s11 + $0x98] sm:$0xff]  ;;  %v1648_v25 = vmul.f32 %v1644_v32, %v1637_v37  ;;  %v1858_v37 = vld [vmem:[#allocation2 + $0x400] sm:$0xff] }
0x1771   :  { %3239 = vmatpush1.bf16.msra.mxu1 %v3238_v49  ;;  %v2761_v49 = vld [vmem:[%s4359_s11 + $0x90] sm:$0xff]  ;;  %v1710_v58 = vmul.f32 %v2762_v15, %v1707_v45  ;;  %v1711_v8 = vmul.f32 %v2763_v10, %v1707_v45 }
0x1772   :  { %3241 = vmatprep.subr.bf16.mxu1 %v3240_v51  ;;  %v1709_v4 = vmul.f32 %v2761_v49, %v1707_v45 }
0x1773   :  { %3175 = vmatpush1.bf16.msra.mxu0 %v3174_v50  ;;  %v2757_v50 = vld [vmem:[%s4359_s11 + $0x70] sm:$0xff] }
0x1774   :  { %3177 = vmatprep.subr.bf16.mxu0 %v3176_v54  ;;  %v1649_v54 = vmul.f32 %v1644_v32, %v1638_v41  ;;  %v1619_v23 = vpop.permute.xlu1 %1618  ;;  %v1714_v41 = vmul.f32 %v2766_v28, %v1707_v45  ;;  %v1884_v28 = vld [vmem:[#allocation2 + $0x4d0] sm:$0xff] }
0x1775   :  { %3243 = vmatpush1.bf16.msra.mxu1 %v3242_v59  ;;  %v1689_v59 = vmul.f32 %v2758_v46, %v1684_v33 }
0x1776   :  { %3245 = vmatprep.subr.bf16.mxu1 %v3244_v9  ;;  %v2765_v9 = vld [vmem:[%s4359_s11 + $0xb0] sm:$0xff] }
0x1777   :  { %3179 = vmatpush1.bf16.msra.mxu0 %v3178_v60  ;;  %v1651_v60 = vmul.f32 %v1644_v32, %v1640_v42  ;;  %v1713_v21 = vmul.f32 %v2765_v9, %v1707_v45  ;;  %v1863_v42 = vld [vmem:[#allocation2 + $0x428] sm:$0xff] }
0x1778   :  { %3181 = vmatprep.subr.bf16.mxu0 %v3180_v6  ;;  %v1688_v6 = vmul.f32 %v2757_v50, %v1684_v33  ;;  %v1628_v10 = vpop.permute.xlu1 %1627 }
0x1779   :  { %3247 = vmatpush1.bf16.msra.mxu1 %v3246_v14 }
0x177a   :  { %3249 = vmatprep.subr.bf16.mxu1 %v3248_v19 }
0x177b   :  { %3183 = vmatpush1.bf16.msra.mxu0 %v3182_v7 }
0x177c   :  { %3185 = vmatprep.subr.bf16.mxu0 %v3184_v24 }
0x177d   :  { %3251 = vmatpush1.bf16.msra.mxu1 %v3250_v26 }
0x177f   :  { %3187 = vmatpush1.bf16.msra.mxu0 %v3186_v29 }
0x17c2   :  { %v1604_v38 = vpop.permute.xlu0 %1603 }
0x17c3   :  { %v1606_v39 = vsel %vm110_vm8, %v1604_v38, 0.0  ;;  %v1636_v38 = vld [vmem:[%s4359_s11 + $0x8] sm:$0xff] }
0x17c4   :  { %1607 = vadd.xlane.f32.xlu0 %v1606_v39  ;;  %v1647_v11 = vmul.f32 %v1644_v32, %v1636_v38 }
0x17da   :  { %1660 = vperm.xlu0 %3415, %v3933_v57   ;;  %v1859_v57 = vld [vmem:[#allocation2 + $0x408] sm:$0xff] }
0x17db   :  { %v3252_v31 = vpack.c.bf16 %v1861_v30, %v1859_v57  ;;  %v1712_v30 = vmul.f32 %v2764_v16, %v1707_v45  ;;  %v1881_v16 = vld [vmem:[#allocation2 + $0x4b8] sm:$0xff] }
0x17dd   :  { %3253 = vmatprep.subr.bf16.mxu1 %v3252_v31 }
0x17de   :  { %3418 = vset.pattern.permute.xlu0 %v3528_v63  ;;  %v1639_v63 = vld [vmem:[%s4359_s11 + $0x20] sm:$0xff] }
0x17df   :  { %v1650_v51 = vmul.f32 %v1644_v32, %v1639_v63  ;;  %v1691_v32 = vmul.f32 %v2760_v17, %v1684_v33  ;;  %v1860_v63 = vld [vmem:[#allocation2 + $0x410] sm:$0xff] }
0x17e0   :  { %v3254_v50 = vpack.c.bf16 %v1860_v63, %v1858_v37 }
0x1851   :  { %v1608_v34 = vpop.xlane.xlu0 %1607 }
0x1852   :  { %v1609_v36 = vmul.f32 0.03125, %v1608_v34 }
0x1854   :  { %v1610_v39 = vadd.f32 1e-05, %v1609_v36 }
0x1856   :  { %3485 = vrsqrt.f32 %v1610_v39 }
0x1859   :  { %v1661_v2 = vpop.permute.xlu0 %1660 }
0x185a   :  { %v1663_v12 = vmul.f32 %v2749_v43, %v1661_v2  ;;  %v1665_v13 = vmul.f32 %v2751_v44, %v1661_v2  ;;  %v1667_v14 = vmul.f32 %v2753_v52, %v1661_v2  ;;  %v1664_v7 = vmul.f32 %v2750_v53, %v1661_v2  ;;  %v1865_v43 = vld [vmem:[#allocation2 + $0x438] sm:$0xff]  ;;  %v1864_v52 = vld [vmem:[#allocation2 + $0x430] sm:$0xff]  ;;  %v1867_v53 = vld [vmem:[#allocation2 + $0x448] sm:$0xff] }
0x185b   :  { %v1666_v18 = vmul.f32 %v2752_v55, %v1661_v2  ;;  %v1668_v19 = vmul.f32 %v2754_v61, %v1661_v2  ;;  %v1873_v61 = vld [vmem:[#allocation2 + $0x478] sm:$0xff]  ;;  %v1870_v2 = vld [vmem:[#allocation2 + $0x460] sm:$0xff] }
0x185c   :  { %v1670_v24 = vadd.f32 %v1664_v7, %v1647_v11  ;;  %v1669_v26 = vadd.f32 %v1663_v12, %v1646_v48  ;;  %v1671_v27 = vadd.f32 %v1665_v13, %v1648_v25  ;;  %v1673_v29 = vadd.f32 %v1667_v14, %v1650_v51  ;;  %v1862_v51 = vld [vmem:[#allocation2 + $0x420] sm:$0xff]  ;;  %v1876_v14 = vld [vmem:[#allocation2 + $0x490] sm:$0xff]  ;;  %v1879_v7 = vld [vmem:[#allocation2 + $0x4a8] sm:$0xff] }
0x185d   :  { %v1672_v57 = vadd.f32 %v1666_v18, %v1649_v54  ;;  %v1674_v31 = vadd.f32 %v1668_v19, %v1651_v60  ;;  %v3256_v25 = vpack.c.bf16 %v1865_v43, %v1863_v42  ;;  %v1869_v54 = vld [vmem:[#allocation2 + $0x458] sm:$0xff]  ;;  %v1871_v60 = vld [vmem:[#allocation2 + $0x468] sm:$0xff]  ;;  %v1874_v13 = vld [vmem:[#allocation2 + $0x480] sm:$0xff]  ;;  %v3272_v18 = vpack.c.bf16 %v1881_v16, %v1879_v7 }
0x185e   :  { %v1693_v34 = vadd.f32 %v1687_v56, %v1670_v24  ;;  %v1692_v35 = vadd.f32 %v1686_v3, %v1669_v26  ;;  %v1694_v36 = vadd.f32 %v1688_v6, %v1671_v27  ;;  %v1696_v38 = vadd.f32 %v1690_v20, %v1673_v29  ;;  %v1872_v3 = vld [vmem:[#allocation2 + $0x470] sm:$0xff]  ;;  %v1877_v6 = vld [vmem:[#allocation2 + $0x498] sm:$0xff]  ;;  %v1878_v19 = vld [vmem:[#allocation2 + $0x4a0] sm:$0xff] }
0x185f   :  { %v1695_v39 = vadd.f32 %v1689_v59, %v1672_v57  ;;  %v1697_v40 = vadd.f32 %v1691_v32, %v1674_v31  ;;  %v3258_v56 = vpack.c.bf16 %v1864_v52, %v1862_v51  ;;  %v1868_v59 = vld [vmem:[#allocation2 + $0x450] sm:$0xff]  ;;  %v3264_v9 = vpack.c.bf16 %v1873_v61, %v1871_v60  ;;  %v1882_v27 = vld [vmem:[#allocation2 + $0x4c0] sm:$0xff]  ;;  %v1887_v29 = vld [vmem:[#allocation2 + $0x4e8] sm:$0xff] }
0x1860   :  { %v3486_v44 = vpop.eup %3485  ;;  %v1716_v15 = vadd.f32 %v1710_v58, %v1693_v34  ;;  %v1715_v46 = vadd.f32 %v1709_v4, %v1692_v35  ;;  %v1717_v47 = vadd.f32 %v1711_v8, %v1694_v36  ;;  %v4025_v48 = vadd.f32 %v1713_v21, %v1696_v38  ;;  %v1866_v58 = vld [vmem:[#allocation2 + $0x440] sm:$0xff]  ;;  %v1875_v4 = vld [vmem:[#allocation2 + $0x488] sm:$0xff]  ;;  %v1880_v20 = vld [vmem:[#allocation2 + $0x4b0] sm:$0xff] }
0x1861   :  { %v1612_v49 = vmul.f32 %v3486_v44, %v3937_v62  ;;  %v1718_v33 = vadd.f32 %v1712_v30, %v1695_v39  ;;  %v1720_v45 = vadd.f32 %v1714_v41, %v1697_v40  ;;  %v3260_v62 = vpack.c.bf16 %v1869_v54, %v1867_v53  ;;  %v1883_v21 = vld [vmem:[#allocation2 + $0x4c8] sm:$0xff]  ;;  %v1889_v57 = vld [vmem:[#allocation2 + $0x4f8] sm:$0xff]  ;;  %v1886_v32 = vld [vmem:[#allocation2 + $0x4e0] sm:$0xff] }
0x1862   :  { %1986 = vmatprep.mubr.f32.mxu0 %v1716_v15  ;;  %v3262_v5 = vpack.c.bf16 %v1868_v59, %v1866_v58  ;;  %v3266_v8 = vpack.c.bf16 %v1872_v3, %v1870_v2  ;;  %v3268_v12 = vpack.c.bf16 %v1877_v6, %v1875_v4  ;;  %v3270_v17 = vpack.c.bf16 %v1876_v14, %v1874_v13  ;;  %v1888_v34 = vld [vmem:[#allocation2 + $0x4f0] sm:$0xff]  ;;  %v1891_v35 = vld [vmem:[#allocation2 + $0x508] sm:$0xff]  ;;  %v1893_v36 = vld [vmem:[#allocation2 + $0x518] sm:$0xff] }
0x1863   :  { %v1621_v11 = vmul.f32 %v1619_v23, %v1612_v49  ;;  %2057 = vmatprep.mubr.f32.mxu1 %v1718_v33  ;;  %1987 = vmatmul.mubr.f32.vlgmr.msra.gmra.mrb[14].mxu0 %v1715_v46  ;;  %v1885_v23 = vld [vmem:[#allocation2 + $0x4d8] sm:$0xff]  ;;  %v3274_v24 = vpack.c.bf16 %v1880_v20, %v1878_v19  ;;  %v3278_v30 = vpack.c.bf16 %v1884_v28, %v1882_v27  ;;  %v1890_v38 = vld [vmem:[#allocation2 + $0x500] sm:$0xff]  ;;  %v1892_v39 = vld [vmem:[#allocation2 + $0x510] sm:$0xff] }
0x1864   :  { %2058 = vmatmul.mubr.f32.vlgmr.msra.gmra.mrb[18].mxu1 %v1717_v47  ;;  %v3276_v26 = vpack.c.bf16 %v1885_v23, %v1883_v21  ;;  %v3280_v31 = vpack.c.bf16 %v1889_v57, %v1887_v29  ;;  %v3282_v37 = vpack.c.bf16 %v1888_v34, %v1886_v32  ;;  %v3284_v63 = vpack.c.bf16 %v1893_v36, %v1891_v35  ;;  %v1895_v40 = vld [vmem:[#allocation2 + $0x528] sm:$0xff]  ;;  %v1897_v41 = vld [vmem:[#allocation2 + $0x538] sm:$0xff]  ;;  %v1894_v44 = vld [vmem:[#allocation2 + $0x520] sm:$0xff] }
0x1865   :  { %3255 = vmatpush1.bf16.msra.mxu1 %v3254_v50  ;;  %2128 = vmatprep.mubr.f32.mxu1 %v1720_v45  ;;  %v1630_v55 = vadd.f32 %v1628_v10, %v1621_v11  ;;  %v3286_v42 = vpack.c.bf16 %v1892_v39, %v1890_v38  ;;  %v3288_v43 = vpack.c.bf16 %v1897_v41, %v1895_v40  ;;  %v1896_v15 = vld [vmem:[#allocation2 + $0x530] sm:$0xff]  ;;  %v1899_v46 = vld [vmem:[#allocation2 + $0x548] sm:$0xff]  ;;  %v1901_v47 = vld [vmem:[#allocation2 + $0x558] sm:$0xff]  ;;  %v2293_v40 = vshrl.u32 %v104_v22, 7 }
0x1866   :  { %3257 = vmatprep.subr.bf16.mxu1 %v3256_v25  ;;  %v3290_v49 = vpack.c.bf16 %v1896_v15, %v1894_v44  ;;  %v3292_v33 = vpack.c.bf16 %v1901_v47, %v1899_v46  ;;  %v1898_v50 = vld [vmem:[#allocation2 + $0x540] sm:$0xff]  ;;  %v1900_v10 = vld [vmem:[#allocation2 + $0x550] sm:$0xff]  ;;  %v1903_v25 = vld [vmem:[#allocation2 + $0x568] sm:$0xff] }
0x1867   :  { %2136 = vrot.lane.b32.xlu1 %v1630_v55, %s3525_s8  ;;  %v1905_v51 = vld [vmem:[#allocation2 + $0x578] sm:$0xff]  ;;  %v3294_v52 = vpack.c.bf16 %v1900_v10, %v1898_v50  ;;  %v1902_v45 = vld [vmem:[#allocation2 + $0x560] sm:$0xff]  ;;  %v1904_v53 = vld [vmem:[#allocation2 + $0x570] sm:$0xff]  ;;  %v4067_v41 = vsub.s32 0, %v2293_v40 }
0x1868   :  { %v3296_v11 = vpack.c.bf16 %v1905_v51, %v1903_v25  ;;  %v1907_v54 = vld [vmem:[#allocation2 + $0x588] sm:$0xff]  ;;  %v1909_v55 = vld [vmem:[#allocation2 + $0x598] sm:$0xff]  ;;  %v1906_v58 = vld [vmem:[#allocation2 + $0x580] sm:$0xff] }
0x1869   :  { %3259 = vmatpush1.bf16.msra.mxu1 %v3258_v56  ;;  %v3298_v56 = vpack.c.bf16 %v1904_v53, %v1902_v45  ;;  %v1908_v59 = vld [vmem:[#allocation2 + $0x590] sm:$0xff]  ;;  %v1911_v60 = vld [vmem:[#allocation2 + $0x5a8] sm:$0xff]  ;;  %v1913_v61 = vld [vmem:[#allocation2 + $0x5b8] sm:$0xff] }
0x186a   :  { %3261 = vmatprep.subr.bf16.mxu1 %v3260_v62  ;;  %v3300_v62 = vpack.c.bf16 %v1909_v55, %v1907_v54  ;;  %v1910_v2 = vld [vmem:[#allocation2 + $0x5a0] sm:$0xff]  ;;  %v1912_v3 = vld [vmem:[#allocation2 + $0x5b0] sm:$0xff]  ;;  %v1915_v4 = vld [vmem:[#allocation2 + $0x5c8] sm:$0xff] }
0x186b   :  { %v1917_v6 = vld [vmem:[#allocation2 + $0x5d8] sm:$0xff]  ;;  %v1914_v13 = vld [vmem:[#allocation2 + $0x5c0] sm:$0xff]  ;;  %v1916_v14 = vld [vmem:[#allocation2 + $0x5d0] sm:$0xff] }
0x186c   :  { %v1919_v7 = vld [vmem:[#allocation2 + $0x5e8] sm:$0xff]  ;;  %v1921_v16 = vld [vmem:[#allocation2 + $0x5f8] sm:$0xff]  ;;  %v1918_v19 = vld [vmem:[#allocation2 + $0x5e0] sm:$0xff] }
0x186d   :  { %3263 = vmatpush1.bf16.msra.mxu1 %v3262_v5  ;;  %v3302_v5 = vpack.c.bf16 %v1908_v59, %v1906_v58  ;;  %v1920_v20 = vld [vmem:[#allocation2 + $0x5f0] sm:$0xff]  ;;  %v1723_v21 = vld [vmem:[%s4360_s0 + $0x8] sm:$0xff]  ;;  %v1725_v23 = vld [vmem:[%s4360_s0 + $0x18] sm:$0xff] }
0x186e   :  { %3265 = vmatprep.subr.bf16.mxu1 %v3264_v9  ;;  %v3304_v9 = vpack.c.bf16 %v1913_v61, %v1911_v60  ;;  %v1722_v27 = vld [vmem:[%s4360_s0] sm:$0xff]  ;;  %v1724_v28 = vld [vmem:[%s4360_s0 + $0x10] sm:$0xff]  ;;  %v1727_v29 = vld [vmem:[%s4360_s0 + $0x28] sm:$0xff] }
0x186f   :  { %v1729_v57 = vld [vmem:[%s4360_s0 + $0x38] sm:$0xff]  ;;  %v1726_v32 = vld [vmem:[%s4360_s0 + $0x20] sm:$0xff]  ;;  %v1728_v34 = vld [vmem:[%s4360_s0 + $0x30] sm:$0xff] }
0x1870   :  { %v3322_v35 = vpack.c.bf16 %v1728_v34, %v1726_v32  ;;  %v2212_v36 = vld [vmem:[%s4319_s12 + $0x8] sm:$0xff]  ;;  %v2367_v22 = vld [vmem:[%s4323_s16 + $0x80] sm:$0xff]  ;;  %v2369_v53 = vld [vmem:[%s4323_s16 + $0x90] sm:$0xff] }
0x1871   :  { %3267 = vmatpush1.bf16.msra.mxu1 %v3266_v8  ;;  %v3306_v8 = vpack.c.bf16 %v1912_v3, %v1910_v2  ;;  %v2368_v51 = vld [vmem:[%s4323_s16 + $0x88] sm:$0xff]  ;;  %v2370_v54 = vld [vmem:[%s4323_s16 + $0x98] sm:$0xff]  ;;  %v2361_v32 = vld [vmem:[%s4323_s16 + $0x50] sm:$0xff] }
0x1872   :  { %3269 = vmatprep.subr.bf16.mxu1 %v3268_v12  ;;  %v3308_v12 = vpack.c.bf16 %v1917_v6, %v1915_v4  ;;  %v2352_v45 = vld [vmem:[%s4323_s16 + $0x8] sm:$0xff]  ;;  %v2354_v58 = vld [vmem:[%s4323_s16 + $0x18] sm:$0xff]  ;;  %v2371_v6 = vld [vmem:[%s4323_s16 + $0xa0] sm:$0xff] }
0x1873   :  { %v2362_v34 = vld [vmem:[%s4323_s16 + $0x58] sm:$0xff] }
0x1875   :  { %3271 = vmatpush1.bf16.msra.mxu1 %v3270_v17  ;;  %v3310_v17 = vpack.c.bf16 %v1916_v14, %v1914_v13  ;;  %v2355_v13 = vld [vmem:[%s4323_s16 + $0x20] sm:$0xff]  ;;  %v2356_v14 = vld [vmem:[%s4323_s16 + $0x28] sm:$0xff] }
0x1876   :  { %3273 = vmatprep.subr.bf16.mxu1 %v3272_v18  ;;  %v3312_v18 = vpack.c.bf16 %v1921_v16, %v1919_v7  ;;  %v3334_v7 = vpack.c.bf16 %v2356_v14, %v2355_v13  ;;  %v2373_v16 = vld [vmem:[%s4323_s16 + $0xb0] sm:$0xff] }
0x1879   :  { %3275 = vmatpush1.bf16.msra.mxu1 %v3274_v24  ;;  %v3314_v24 = vpack.c.bf16 %v1920_v20, %v1918_v19  ;;  %v2357_v19 = vld [vmem:[%s4323_s16 + $0x30] sm:$0xff]  ;;  %v2358_v20 = vld [vmem:[%s4323_s16 + $0x38] sm:$0xff] }
0x187a   :  { %3277 = vmatprep.subr.bf16.mxu1 %v3276_v26  ;;  %v3316_v26 = vpack.c.bf16 %v1725_v23, %v1723_v21  ;;  %v2375_v21 = vld [vmem:[%s4323_s16 + $0xc0] sm:$0xff]  ;;  %v3338_v23 = vpack.c.bf16 %v2358_v20, %v2357_v19  ;;  %v2495_v20 = vld [vmem:[%s4327_s20 + $0x30] sm:$0xff] }
0x187d   :  { %3279 = vmatpush1.bf16.msra.mxu1 %v3278_v30  ;;  %v3318_v30 = vpack.c.bf16 %v1724_v28, %v1722_v27  ;;  %v2360_v27 = vld [vmem:[%s4323_s16 + $0x48] sm:$0xff] }
0x187e   :  { %3281 = vmatprep.subr.bf16.mxu1 %v3280_v31  ;;  %v3320_v31 = vpack.c.bf16 %v1729_v57, %v1727_v29  ;;  %v2377_v29 = vld [vmem:[%s4323_s16 + $0xd0] sm:$0xff]  ;;  %v2378_v57 = vld [vmem:[%s4323_s16 + $0xd8] sm:$0xff] }
0x1881   :  { %3283 = vmatpush1.bf16.msra.mxu1 %v3282_v37  ;;  %v2211_v37 = vld [vmem:[%s4319_s12] sm:$0xff] }
0x1882   :  { %3285 = vmatprep.subr.bf16.mxu1 %v3284_v63 }
0x1885   :  { %3287 = vmatpush1.bf16.msra.mxu1 %v3286_v42  ;;  %v2290_v42 = vld [vmem:[%s4320_s13] sm:$0x3] }
0x1886   :  { %3289 = vmatprep.subr.bf16.mxu1 %v3288_v43  ;;  %v4072_v43 = vsub.s32 1, %v2293_v40  ;;  %v2295_v44 = vrot.slane %v2290_v42, %v4067_v41  ;;  %v2382_v40 = vld [vmem:[%s4323_s16 + $0xf8] sm:$0xff] }
0x1888   :  { %v2299_v46 = vrot.slane %v2290_v42, %v4072_v43 }
0x1889   :  { %3291 = vmatpush1.bf16.msra.mxu1 %v3290_v49 }
0x188a   :  { %3293 = vmatprep.subr.bf16.mxu1 %v3292_v33 }
0x188d   :  { %3295 = vmatpush1.bf16.msra.mxu1 %v3294_v52  ;;  %v2351_v52 = vld [vmem:[%s4323_s16] sm:$0xff] }
0x188e   :  { %3297 = vmatprep.subr.bf16.mxu1 %v3296_v11  ;;  %v3324_v11 = vpack.c.bf16 %v2368_v51, %v2367_v22  ;;  %v3326_v55 = vpack.c.bf16 %v2352_v45, %v2351_v52 }
0x1890   :  { %3325 = vmatprep.subr.bf16.mxu0 %v3324_v11 }
0x1891   :  { %3299 = vmatpush1.bf16.msra.mxu1 %v3298_v56  ;;  %v3328_v56 = vpack.c.bf16 %v2370_v54, %v2369_v53  ;;  %3327 = vmatpush3.bf16.msra.mxu0 %v3326_v55 }
0x1892   :  { %3301 = vmatprep.subr.bf16.mxu1 %v3300_v62  ;;  %v2353_v62 = vld [vmem:[%s4323_s16 + $0x10] sm:$0xff] }
0x1893   :  { %v3330_v59 = vpack.c.bf16 %v2354_v58, %v2353_v62  ;;  %3329 = vmatprep.subr.bf16.mxu0 %v3328_v56 }
0x1895   :  { %3303 = vmatpush1.bf16.msra.mxu1 %v3302_v5  ;;  %3331 = vmatpush3.bf16.msra.mxu0 %v3330_v59 }
0x1896   :  { %3305 = vmatprep.subr.bf16.mxu1 %v3304_v9 }
0x1899   :  { %3307 = vmatpush1.bf16.msra.mxu1 %v3306_v8  ;;  %v2372_v8 = vld [vmem:[%s4323_s16 + $0xa8] sm:$0xff] }
0x189a   :  { %3309 = vmatprep.subr.bf16.mxu1 %v3308_v12  ;;  %v3332_v12 = vpack.c.bf16 %v2372_v8, %v2371_v6  ;;  %v2492_v8 = vld [vmem:[%s4327_s20 + $0x18] sm:$0xff] }
0x189c   :  { %3333 = vmatprep.subr.bf16.mxu0 %v3332_v12 }
0x189d   :  { %3311 = vmatpush1.bf16.msra.mxu1 %v3310_v17  ;;  %3335 = vmatpush3.bf16.msra.mxu0 %v3334_v7  ;;  %v2374_v17 = vld [vmem:[%s4323_s16 + $0xb8] sm:$0xff] }
0x189e   :  { %3313 = vmatprep.subr.bf16.mxu1 %v3312_v18  ;;  %v3336_v18 = vpack.c.bf16 %v2374_v17, %v2373_v16  ;;  %v2493_v17 = vld [vmem:[%s4327_s20 + $0x20] sm:$0xff] }
0x18a0   :  { %3337 = vmatprep.subr.bf16.mxu0 %v3336_v18  ;;  %v2494_v18 = vld [vmem:[%s4327_s20 + $0x28] sm:$0xff] }
0x18a1   :  { %3315 = vmatpush1.bf16.msra.mxu1 %v3314_v24  ;;  %v2376_v24 = vld [vmem:[%s4323_s16 + $0xc8] sm:$0xff]  ;;  %3339 = vmatpush3.bf16.msra.mxu0 %v3338_v23  ;;  %v3363_v19 = vpack.c.bf16 %v2494_v18, %v2493_v17 }
0x18a2   :  { %3317 = vmatprep.subr.bf16.mxu1 %v3316_v26  ;;  %v2359_v26 = vld [vmem:[%s4323_s16 + $0x40] sm:$0xff]  ;;  %v3340_v28 = vpack.c.bf16 %v2376_v24, %v2375_v21  ;;  %v2496_v21 = vld [vmem:[%s4327_s20 + $0x38] sm:$0xff] }
0x18a3   :  { %v3366_v23 = vpack.c.bf16 %v2496_v21, %v2495_v20  ;;  %v2497_v24 = vld [vmem:[%s4327_s20 + $0x40] sm:$0xff] }
0x18a4   :  { %2129 = vmatmul.mubr.f32.vlgmr.msra.gmra.mrb[18].mxu1 %v4025_v48  ;;  %v1721_v48 = vld [vmem:[%s4361_s5] sm:$0xff]  ;;  %3341 = vmatprep.subr.bf16.mxu0 %v3340_v28  ;;  %v2499_v28 = vld [vmem:[%s4327_s20 + $0x50] sm:$0xff] }
0x18a5   :  { %3319 = vmatpush1.bf16.msra.mxu1 %v3318_v30  ;;  %2204 = vmatprep.mubr.f32.mxu1 %v3521_v1  ;;  %v3342_v30 = vpack.c.bf16 %v2360_v27, %v2359_v26  ;;  %v2498_v26 = vld [vmem:[%s4327_s20 + $0x48] sm:$0xff] }
0x18a6   :  { %3321 = vmatprep.subr.bf16.mxu1 %v3320_v31  ;;  %v3344_v31 = vpack.c.bf16 %v2378_v57, %v2377_v29  ;;  %v3369_v27 = vpack.c.bf16 %v2498_v26, %v2497_v24  ;;  %v2500_v29 = vld [vmem:[%s4327_s20 + $0x58] sm:$0xff] }
0x18a7   :  { %3343 = vmatpush3.bf16.msra.mxu0 %v3342_v30  ;;  %v3372_v57 = vpack.c.bf16 %v2500_v29, %v2499_v28  ;;  %v2501_v30 = vld [vmem:[%s4327_s20 + $0x60] sm:$0xff] }
0x18a8   :  { %3345 = vmatprep.subr.bf16.mxu0 %v3344_v31  ;;  %v2502_v31 = vld [vmem:[%s4327_s20 + $0x68] sm:$0xff] }
0x18a9   :  { %3323 = vmatpush1.bf16.msra.mxu1 %v3322_v35  ;;  %v2379_v35 = vld [vmem:[%s4323_s16 + $0xe0] sm:$0xff] }
0x18aa   :  { %2217 = vmatprep.subr.mxu1 %v2212_v36  ;;  %v2380_v36 = vld [vmem:[%s4323_s16 + $0xe8] sm:$0xff] }
0x18d9   :  { %v2137_v63 = vpop.permute.xlu1 %2136 }
0x18da   :  { %2767 = vmatmul.mubr.msk.f32.vlgmr.msra.gmra.mrb[18].mxu1 %vm110_vm8, %v2137_v63  ;;  %v3348_v63 = vpack.c.bf16 %v2380_v36, %v2379_v35  ;;  %v2504_v35 = vld [vmem:[%s4327_s20 + $0x78] sm:$0xff]  ;;  %vm2584_vm8 = vcmask 523264  }
0x18db   :  { %2218 = vmatpush1.msra.mxu1 %v2211_v37  ;;  %2281 = vmatprep.mubr.f32.mxu1 %v3521_v1  ;;  %v3346_v37 = vpack.c.bf16 %v2362_v34, %v2361_v32  ;;  %v3375_v32 = vpack.c.bf16 %v2502_v31, %v2501_v30  ;;  %v2503_v34 = vld [vmem:[%s4327_s20 + $0x70] sm:$0xff] }
0x18dc   :  { %v3378_v36 = vpack.c.bf16 %v2504_v35, %v2503_v34 }
0x18dd   :  { %3347 = vmatpush3.bf16.msra.mxu0 %v3346_v37 }
0x18de   :  { %3349 = vmatprep.subr.bf16.mxu0 %v3348_v63 }
0x18e2   :  { %2768 = vmatmul.mubr.msk.f32.vlgmr.msra.gmra.mrb[18].mxu1 %vm2213_vm9, %v1721_v48  ;;  %v2363_v48 = vld [vmem:[%s4323_s16 + $0x60] sm:$0xff] }
0x1936   :  { %v1988_v38 = vpop.f32.mrb[14].mxu0 }
0x1937   :  { %v1990_v39 = vpop.f32.mrb[15].mxu0 }
0x19b5   :  { %v2283_v15 = vpop.f32.mrb[18].mxu1 }
0x19b6   :  { %v3392_v47 = vadd.f32 %v2283_v15, %v1988_v38  ;;  %v2285_v49 = vpop.f32.mrb[19].mxu1  ;;  %v2364_v38 = vld [vmem:[%s4323_s16 + $0x68] sm:$0xff]  ;;  %v2365_v15 = vld [vmem:[%s4323_s16 + $0x70] sm:$0xff] }
0x19b7   :  { %v3393_v33 = vadd.f32 %v2285_v49, %v1990_v39  ;;  %v2381_v39 = vld [vmem:[%s4323_s16 + $0xf0] sm:$0xff]  ;;  %v3350_v42 = vpack.c.bf16 %v2364_v38, %v2363_v48 }
0x19b8   :  { %v2302_v50 = vadd.f32 %v3392_v47, %v2295_v44  ;;  %v3352_v44 = vpack.c.bf16 %v2382_v40, %v2381_v39  ;;  %v2770_v39 = vld [vmem:[%s4325_s18] ss:$0 sm:$0xff] }
0x19b9   :  { %v2303_v10 = vadd.f32 %v3393_v33, %v2299_v46  ;;  %v2366_v46 = vld [vmem:[%s4323_s16 + $0x78] sm:$0xff]  ;;  %3351 = vmatpush3.bf16.msra.mxu0 %v3350_v42  ;;  %v2771_v42 = vld [vmem:[%s4326_s19] ss:$0 sm:$0xff] }
0x19ba   :  { %v3354_v47 = vpack.c.bf16 %v2366_v46, %v2365_v15  ;;  %3353 = vmatprep.subr.bf16.mxu0 %v3352_v44 }
0x19bb   :  { %v2306_v25 = vadd.f32 %v2303_v10, %v2302_v50 }
0x19bd   :  { %2307 = vadd.xlane.f32.xlu1 %v2306_v25  ;;  %3355 = vmatpush3.bf16.msra.mxu0 %v3354_v47  ;;  %v2305_v25 = vld [vmem:[%s4322_s15] sm:$0x3] }
0x19be   :  { %3356 = vmatprep.subr.bf16.mxu0 %v3520_v0  ;;  %v2340_v45 = vrot.slane %v2305_v25, %v4067_v41  ;;  %v2344_v53 = vrot.slane %v2305_v25, %v4072_v43  ;;  %v2772_v47 = vld [vmem:[%s4328_s21] ss:$0 sm:$0xff] }
0x1a4a   :  { %v2308_v60 = vpop.xlane.xlu1 %2307 }
0x1a4b   :  { %v2310_v61 = vmul.f32 0.00390625, %v2308_v60 }
0x1a4d   :  { %v4100_v5 = vsub.f32 %v2302_v50, %v2310_v61  ;;  %v4102_v9 = vsub.f32 %v2303_v10, %v2310_v61  ;;  %v2304_v10 = vld [vmem:[%s4321_s14] sm:$0x3] }
0x1a4e   :  { %v2327_v22 = vrot.slane %v2304_v10, %v4067_v41  ;;  %v2331_v51 = vrot.slane %v2304_v10, %v4072_v43  ;;  %v2769_v41 = vld [vmem:[%s4324_s17] ss:$0 sm:$0xff] }
0x1a4f   :  { %v2313_v2 = vmul.f32 %v4100_v5, %v4100_v5  ;;  %v2314_v3 = vmul.f32 %v4102_v9, %v4102_v9 }
0x1a51   :  { %v2315_v4 = vadd.f32 %v2314_v3, %v2313_v2  ;;  %v2490_v3 = vld [vmem:[%s4327_s20 + $0x8] sm:$0xff] }
0x1a53   :  { %2316 = vadd.xlane.f32.xlu0 %v2315_v4  ;;  %v2491_v4 = vld [vmem:[%s4327_s20 + $0x10] sm:$0xff] }
0x1a54   :  { %v3360_v12 = vpack.c.bf16 %v2492_v8, %v2491_v4 }
0x1ae0   :  { %v2317_v49 = vpop.xlane.xlu0 %2316 }
0x1ae1   :  { %v2318_v33 = vmul.f32 0.00390625, %v2317_v49 }
0x1ae3   :  { %v2319_v50 = vadd.f32 1e-05, %v2318_v33 }
0x1ae5   :  { %3487 = vrsqrt.f32 %v2319_v50 }
0x1aef   :  { %v3488_v52 = vpop.eup %3487 }
0x1af0   :  { %v2322_v11 = vmul.f32 %v3488_v52, %v4102_v9  ;;  %v2321_v54 = vmul.f32 %v3488_v52, %v4100_v5  ;;  %v2489_v5 = vld [vmem:[%s4327_s20] sm:$0xff] }
0x1af1   :  { %v3357_v6 = vpack.c.bf16 %v2490_v3, %v2489_v5  ;;  %v2773_v3 = vld [vmem:[%s4329_s22] ss:$0 sm:$0xff] }
0x1af2   :  { %v2335_v55 = vmul.f32 %v2331_v51, %v2322_v11  ;;  %v2334_v56 = vmul.f32 %v2327_v22, %v2321_v54  ;;  %v2616_v54 = vld [vmem:[%s4331_s24 + $0x10] sm:$0xff] }
0x1af4   :  { %v2348_v62 = vadd.f32 %v2344_v53, %v2335_v55  ;;  %v2347_v58 = vadd.f32 %v2340_v45, %v2334_v56  ;;  %v2615_v45 = vld [vmem:[%s4331_s24 + $0x8] sm:$0xff]  ;;  %v2617_v55 = vld [vmem:[%s4331_s24 + $0x18] sm:$0xff] }
0x1af5   :  { %v3384_v56 = vpack.c.bf16 %v2617_v55, %v2616_v54 }
0x1af6   :  { %v2350_v59 = vmax.f32 %v2348_v62, 0.0  ;;  %v2349_v60 = vmax.f32 %v2347_v58, 0.0  ;;  %v2618_v62 = vld [vmem:[%s4331_s24 + $0x20] sm:$0xff]  ;;  %v2619_v58 = vld [vmem:[%s4331_s24 + $0x28] sm:$0xff] }
0x1af8   :  { %2454 = vmatprep.mubr.f32.mxu0 %v2350_v59  ;;  %v3387_v59 = vpack.c.bf16 %v2619_v58, %v2618_v62 }
0x1af9   :  { %2455 = vmatmul.mubr.f32.vlgmr.msra.gmra.mrb[16].mxu0 %v2349_v60  ;;  %v2620_v60 = vld [vmem:[%s4331_s24 + $0x30] sm:$0xff] }
0x1afa   :  { %3054 = vmatprep.mubr.msk.f32.mxu0 %vm3522_vm0, %v3521_v1  ;;  %3358 = vmatpush3.bf16.msra.mxu0 %v3357_v6  ;;  %v2774_v6 = vld [vmem:[%s4330_s23] ss:$0 sm:$0xff] }
0x1afb   :  { %3359 = vmatprep.subr.bf16.mxu0 %v3520_v0 }
0x1afe   :  { %3361 = vmatpush3.bf16.msra.mxu0 %v3360_v12 }
0x1aff   :  { %3362 = vmatprep.subr.bf16.mxu0 %v3520_v0 }
0x1b02   :  { %3364 = vmatpush3.bf16.msra.mxu0 %v3363_v19 }
0x1b03   :  { %3365 = vmatprep.subr.bf16.mxu0 %v3520_v0 }
0x1b06   :  { %3367 = vmatpush3.bf16.msra.mxu0 %v3366_v23 }
0x1b07   :  { %3368 = vmatprep.subr.bf16.mxu0 %v3520_v0 }
0x1b0a   :  { %3370 = vmatpush3.bf16.msra.mxu0 %v3369_v27 }
0x1b0b   :  { %3371 = vmatprep.subr.bf16.mxu0 %v3520_v0 }
0x1b0e   :  { %3373 = vmatpush3.bf16.msra.mxu0 %v3372_v57 }
0x1b0f   :  { %3374 = vmatprep.subr.bf16.mxu0 %v3520_v0 }
0x1b12   :  { %3376 = vmatpush3.bf16.msra.mxu0 %v3375_v32 }
0x1b13   :  { %3377 = vmatprep.subr.bf16.mxu0 %v3520_v0 }
0x1b16   :  { %3379 = vmatpush3.bf16.msra.mxu0 %v3378_v36 }
0x1b17   :  { %3380 = vmatprep.subr.bf16.mxu0 %v3520_v0 }
0x1bcc   :  { %v2865_v61 = vpop.f32.mrb[16].mxu0 }
0x1bcd   :  { %v2866_v2 = vpop.f32.mrb[17].mxu0 }
0x1bce   :  { %v2867_v43 = vadd.f32 %v2866_v2, %v2865_v61  ;;  %v2621_v61 = vld [vmem:[%s4331_s24 + $0x38] sm:$0xff] }
0x1bcf   :  { %v3390_v2 = vpack.c.bf16 %v2621_v61, %v2620_v60 }
0x1bd0   :  { %v2457_v9 = vadd.f32 %v2867_v43, %v2769_v41 }
0x1bd2   :  { %2462 = vadd.xlane.f32.xlu1 %v2457_v9 }
0x1c5f   :  { %v2463_v13 = vpop.xlane.xlu1 %2462 }
0x1c60   :  { %v2465_v14 = vmul.f32 0.0078125, %v2463_v13 }
0x1c62   :  { %v2466_v7 = vsub.f32 %v2457_v9, %v2465_v14 }
0x1c64   :  { %v2467_v16 = vmul.f32 %v2466_v7, %v2466_v7 }
0x1c66   :  { %2468 = vadd.xlane.f32.xlu1 %v2467_v16 }
0x1cf3   :  { %v2469_v37 = vpop.xlane.xlu1 %2468 }
0x1cf4   :  { %v2470_v63 = vmul.f32 0.0078125, %v2469_v37 }
0x1cf6   :  { %v2471_v48 = vadd.f32 1e-05, %v2470_v63 }
0x1cf8   :  { %3489 = vrsqrt.f32 %v2471_v48 }
0x1d02   :  { %v3490_v38 = vpop.eup %3489 }
0x1d03   :  { %v2473_v40 = vmul.f32 %v3490_v38, %v2466_v7 }
0x1d05   :  { %v2480_v44 = vmul.f32 %v2770_v39, %v2473_v40 }
0x1d07   :  { %v2487_v15 = vadd.f32 %v2771_v42, %v2480_v44 }
0x1d09   :  { %v2488_v46 = vmax.f32 %v2487_v15, 0.0 }
0x1d0b   :  { %3055 = vmatmul.mubr.f32.vlgmr.msra.gmra.mrb[18].mxu0 %v2488_v46 }
0x1d0c   :  { %3073 = vmatprep.mubr.msk.f32.mxu0 %vm3522_vm0, %v3521_v1  ;;  %v2614_v1 = vld [vmem:[%s4331_s24] sm:$0xff] }
0x1d0d   :  { %v3381_v53 = vpack.c.bf16 %v2615_v45, %v2614_v1 }
0x1d0f   :  { %3382 = vmatpush3.bf16.msra.mxu0 %v3381_v53 }
0x1d10   :  { %3383 = vmatprep.subr.bf16.mxu0 %v3520_v0 }
0x1d13   :  { %3385 = vmatpush3.bf16.msra.mxu0 %v3384_v56 }
0x1d14   :  { %3386 = vmatprep.subr.bf16.mxu0 %v3520_v0 }
0x1d17   :  { %3388 = vmatpush3.bf16.msra.mxu0 %v3387_v59 }
0x1d18   :  { %3389 = vmatprep.subr.bf16.mxu0 %v3520_v0  ;;  %v2775_v0 = vld [vmem:[%s4332_s25] ss:$0 sm:$0xff] }
0x1d1b   :  { %3391 = vmatpush3.bf16.msra.mxu0 %v3390_v2 }
0x1dde   :  { %v2578_v49 = vpop.f32.mrb[18].mxu0 }
0x1ddf   :  { %v2579_v33 = vadd.f32 %v2772_v47, %v2578_v49  ;;  %v3056_v50 = vpop.f32.mrb[19].mxu0 }
0x1de1   :  { %v2585_v10 = vsel %vm2584_vm8, %v2579_v33, 0.0 }
0x1de2   :  { %2586 = vadd.xlane.f32.xlu0 %v2585_v10 }
0x1e6f   :  { %v2587_v25 = vpop.xlane.xlu0 %2586 }
0x1e70   :  { %v2589_v22 = vmul.f32 0.015625, %v2587_v25 }
0x1e72   :  { %v2590_v51 = vsub.f32 %v2579_v33, %v2589_v22 }
0x1e74   :  { %v2591_v52 = vmul.f32 %v2590_v51, %v2590_v51 }
0x1e76   :  { %v2592_v11 = vsel %vm2584_vm8, %v2591_v52, 0.0 }
0x1e77   :  { %2593 = vadd.xlane.f32.xlu1 %v2592_v11 }
0x1f04   :  { %v2594_v41 = vpop.xlane.xlu1 %2593 }
0x1f05   :  { %v2595_v43 = vmul.f32 0.015625, %v2594_v41 }
0x1f07   :  { %v2596_v9 = vadd.f32 1e-05, %v2595_v43 }
0x1f09   :  { %3491 = vrsqrt.f32 %v2596_v9 }
0x1f13   :  { %v3492_v5 = vpop.eup %3491 }
0x1f14   :  { %v2598_v4 = vmul.f32 %v3492_v5, %v2590_v51 }
0x1f16   :  { %v2605_v8 = vmul.f32 %v2773_v3, %v2598_v4 }
0x1f18   :  { %v2612_v12 = vadd.f32 %v2774_v6, %v2605_v8 }
0x1f1a   :  { %v2613_v13 = vmax.f32 %v2612_v12, 0.0 }
0x1f1c   :  { %3074 = vmatmul.mubr.msk.f32.vlgmr.msra.gmra.mrb[20].mxu0 %vm2584_vm8, %v2613_v13 }
0x1fef   :  { %v2698_v14 = vpop.f32.mrb[20].mxu0 }
0x1ff0   :  { %v2699_v7 = vadd.f32 %v2775_v0, %v2698_v14  ;;  %v3075_v16 = vpop.f32.mrb[21].mxu0 }
0x1ff2   :  { %2702 = vst [vmem:[%s4333_s26] sm:$0xff] %v2699_v7 }
0x1ff3   :  { %2707 = vsyncpa [#allocation3], 1 }

</bundles_post_ra>
